<compile_context>
chip_gen: v7x
topology: tpu7x:2x2x1
jax: 0.10.0
libtpu: 0.0.40
codegen_flags: <defaults>
</compile_context>

<pallas_src>
import functools

import numpy as np

import jax
import jax.numpy as jnp
from jax import lax
from jax.experimental import pallas as pl
from jax.experimental.pallas import tpu as pltpu


def _densenet_bottleneck_kernel(x_ref, s1_ref, b1_ref, w1_ref, s2_ref, b2_ref,
                                w2_ref, mask_ref, o_ref, patch_ref, *,
                                W, Nb, split_store):
    """One grid step == Nb batch elements; layout (C, H*W_padded), lanes = HW."""
    C1 = x_ref.shape[1]
    HWp = x_ref.shape[2]
    Cm = w1_ref.shape[0]

    # Weights / BN vectors: loaded once per grid step, reused for all Nb planes.
    s1 = s1_ref[...]
    b1 = b1_ref[...]
    w1 = w1_ref[...]
    s2 = s2_ref[...]
    b2 = b2_ref[...]
    w2 = w2_ref[...]

    for b in range(Nb):                       # unrolled: amortizes step overhead
        x = x_ref[b]                                               # (C1, HWp) f32

        # ---- bn1 -> relu -> 1x1 conv (bf16 MXU operands, f32 accumulate) ----
        a1 = jnp.maximum(x * s1 + b1, 0.0)                         # f32
        h1 = jnp.dot(w1, a1.astype(jnp.bfloat16),
                     preferred_element_type=jnp.float32)           # (Cm, HWp) f32

        # ---- bn2 -> relu (f32; mask multiply also f32 -> no bf16 VALU on v5e) ----
        a2 = jnp.maximum(h1 * s2 + b2, 0.0)                        # (Cm, HWp) f32

        # ---- 3x3 conv (pad=1) as im2col: 9 lane-rolls + border/pad masks.
        # Each tap is staged into the VMEM patch scratch as it is produced
        # (bounds live vregs to one tap, no concat materialization), then a
        # single (C2, 9*Cm) x (9*Cm, HWp) matmul hits the MXU once.
        k = 0
        for dy in (-1, 0, 1):
            for dx in (-1, 0, 1):
                off = dy * W + dx
                t = a2 if off == 0 else pltpu.roll(a2, shift=(-off) % HWp, axis=1)
                t = t * mask_ref[k:k + 1, :]   # zero wrapped / out-of-image / pad lanes
                patch_ref[k * Cm:(k + 1) * Cm, :] = t.astype(jnp.bfloat16)
                k += 1
        # TODO(synk): on v7x (MRB) use 9 accumulating matmuls and drop patch_ref.
        h2 = jnp.dot(w2, patch_ref[...],
                     preferred_element_type=jnp.float32)           # (C2, HWp) f32

        # ---- DenseNet concat: out = [x, conv2(...)] along channels ----
        if split_store:
            # channel boundary is sublane-aligned -> two unmasked stores
            o_ref[b, :C1, :] = x
            o_ref[b, C1:, :] = h2
        else:
            # compose in registers -> one store starting at sublane 0
            # (avoids masked read-modify-write at a non-multiple-of-8 boundary)
            o_ref[b] = jnp.concatenate([x, h2], axis=0)


def _pick_nb(N, C1, Cout, HWp, budget_bytes=8 << 20):
    """Batch elements per grid step: amortize step overhead, stay VMEM-friendly."""
    per = (C1 + Cout) * HWp * 4                  # f32 input + output plane / element
    nb = int(max(1, min(N, 8, budget_bytes // max(per, 1))))
    while N % nb:
        nb -= 1
    return nb


@jax.jit
def densenet_bottleneck_pallas(x_nchw, params):
    N, C1, H, W = x_nchw.shape
    HW = H * W
    HWp = ((HW + 127) // 128) * 128              # pad lane axis to multiple of 128
    Cm = params["w1"].shape[0]                   # c_ = 4 * c2
    C2 = params["w2"].shape[3]
    Cout = C1 + C2

    # NCHW kept, HW flattened (and zero-padded) onto lanes -- no transpose needed.
    x = x_nchw.reshape(N, C1, HW).astype(jnp.float32)
    if HWp != HW:
        x = jnp.pad(x, ((0, 0), (0, 0), (0, HWp - HW)))

    s1 = params["s1"].reshape(C1, 1).astype(jnp.float32)
    b1 = params["b1"].reshape(C1, 1).astype(jnp.float32)
    s2 = params["s2"].reshape(Cm, 1).astype(jnp.float32)
    b2 = params["b2"].reshape(Cm, 1).astype(jnp.float32)
    w1 = params["w1"].astype(jnp.bfloat16)                                  # (Cm, C1)
    # HWIO (3,3,Cm,C2) -> (C2, ky, kx, Cm) -> (C2, 9*Cm), matching tap order.
    w2 = jnp.transpose(params["w2"], (3, 0, 1, 2)).reshape(C2, 9 * Cm)
    w2 = w2.astype(jnp.bfloat16)

    # Border-validity + pad-lane masks for the 9 taps (trace-time constants, f32).
    lane = np.arange(HWp)
    ys, xs = np.divmod(lane, W)
    in_img = lane < HW
    masks = np.stack([(in_img & (ys + dy >= 0) & (ys + dy < H) &
                       (xs + dx >= 0) & (xs + dx < W)).astype(np.float32)
                      for dy in (-1, 0, 1) for dx in (-1, 0, 1)])
    masks = jnp.asarray(masks, jnp.float32)                                 # (9, HWp)

    Nb = _pick_nb(N, C1, Cout, HWp)
    split_store = (C1 % 8 == 0)

    kernel = functools.partial(_densenet_bottleneck_kernel,
                               W=W, Nb=Nb, split_store=split_store)
    const = lambda shape: pl.BlockSpec(shape, lambda n: (0,) * len(shape))
    # TODO(synk): pipeline_mode=pl.Buffered(1) on the constant specs would halve
    # their VMEM footprint on v7x; left at default buffering for portability.

    # Scoped-VMEM budget: double-buffered activation blocks + resident weights
    # + im2col scratch, with 2x headroom (defaults are only 16/32 MiB).
    foot = (2 * Nb * (C1 + Cout) * HWp * 4
            + 2 * ((C1 + Cm) * 2 * 4 + Cm * C1 * 2 + C2 * 9 * Cm * 2 + 9 * HWp * 4)
            + 9 * Cm * HWp * 2)
    vmem_limit = int(min(96 << 20, max(32 << 20, 2 * foot)))

    out = pl.pallas_call(
        kernel,
        out_shape=jax.ShapeDtypeStruct((N, Cout, HWp), jnp.float32),
        grid=(N // Nb,),
        in_specs=[
            pl.BlockSpec((Nb, C1, HWp), lambda n: (n, 0, 0)),  # x (Nb planes / step)
            const((C1, 1)), const((C1, 1)),                    # bn1 scale / bias
            const((Cm, C1)),                                   # conv1 weight
            const((Cm, 1)), const((Cm, 1)),                    # bn2 scale / bias
            const((C2, 9 * Cm)),                               # conv2 im2col weight
            const((9, HWp)),                                   # tap masks
        ],
        out_specs=pl.BlockSpec((Nb, Cout, HWp), lambda n: (n, 0, 0)),
        scratch_shapes=[pltpu.VMEM((9 * Cm, HWp), jnp.bfloat16)],
        compiler_params=pltpu.CompilerParams(
            dimension_semantics=("parallel",),
            vmem_limit_bytes=vmem_limit),
    )(x, s1, b1, w1, s2, b2, w2, masks)

    if HWp != HW:
        out = out[..., :HW]
    return out.reshape(N, Cout, H, W)


def _fold_bn(gamma, beta, mean, var, eps=1e-5):
    scale = gamma / jnp.sqrt(var + eps)
    bias = beta - mean * scale
    return scale, bias


def make_params(key, c1, c2):
    c_ = 4 * c2
    ks = jax.random.split(key, 4)

    def bn(k, c):
        k0, k1, k2, k3 = jax.random.split(k, 4)
        gamma = jax.random.uniform(k0, (c,), jnp.float32, 0.5, 1.5)
        beta = 0.1 * jax.random.normal(k1, (c,), jnp.float32)
        mean = 0.1 * jax.random.normal(k2, (c,), jnp.float32)
        var = jax.random.uniform(k3, (c,), jnp.float32, 0.5, 1.5)
        return _fold_bn(gamma, beta, mean, var)

    s1, b1 = bn(ks[0], c1)
    s2, b2 = bn(ks[1], c_)
    w1 = 0.2 * jax.random.normal(ks[2], (c_, c1), jnp.float32)        # 1x1, (Cout, Cin)
    w2 = 0.2 * jax.random.normal(ks[3], (3, 3, c_, c2), jnp.float32)  # HWIO
    return dict(s1=s1, b1=b1, w1=w1, s2=s2, b2=b2, w2=w2)


def densenet_bottleneck_reference(x_nchw, p):
    """Pure-JAX (XLA) reference, same bf16-operand / f32-accumulate policy."""
    N, C1, H, W = x_nchw.shape
    x = x_nchw.astype(jnp.float32)
    s1 = p["s1"].reshape(1, C1, 1, 1)
    b1 = p["b1"].reshape(1, C1, 1, 1)
    a1 = jax.nn.relu(x * s1 + b1).astype(jnp.bfloat16)
    h1 = jnp.einsum("oc,nchw->nohw", p["w1"].astype(jnp.bfloat16), a1,
                    preferred_element_type=jnp.float32)
    Cm = h1.shape[1]
    s2 = p["s2"].reshape(1, Cm, 1, 1)
    b2 = p["b2"].reshape(1, Cm, 1, 1)
    a2 = jax.nn.relu(h1 * s2 + b2).astype(jnp.bfloat16)
    h2 = lax.conv_general_dilated(
        a2, p["w2"].astype(jnp.bfloat16), (1, 1), "SAME",
        dimension_numbers=("NCHW", "HWIO", "NCHW"),
        preferred_element_type=jnp.float32)
    return jnp.concatenate([x, h2], axis=1)


if __name__ == "__main__":
    # DenseNetBottleneck(c1=4, c2=8): c_ = 32, output channels = c1 + c2 = 12.
    N, C1, H, W = 2, 4, 16, 16
    C2 = 8

    key = jax.random.PRNGKey(0)
    kx, kp = jax.random.split(key)
    x = jax.random.normal(kx, (N, C1, H, W), jnp.float32)   # NCHW, like PyTorch
    params = make_params(kp, C1, C2)

    out = jax.block_until_ready(densenet_bottleneck_pallas(x, params))
    ref = jax.block_until_ready(densenet_bottleneck_reference(x, params))

    assert out.shape == (N, C1 + C2, H, W)
    assert out.dtype == jnp.float32
    # bf16 MXU operands with f32 accumulation in both kernel and reference;
    # remaining differences are summation-order / rounding-tie level.
    assert jnp.allclose(out, ref, rtol=1e-2, atol=1e-2), \
        f"max abs err {jnp.max(jnp.abs(out - ref))}"

    print("KERNEL_OK")
</pallas_src>

<mosaic_0001>
module attributes {stable_mosaic.version = 11 : i64} {
  func.func @_densenet_bottleneck_kernel(%arg0: i32, %arg1: memref<2x4x256xf32, #tpu.memory_space<vmem>>, %arg2: memref<4x1xf32, #tpu.memory_space<vmem>>, %arg3: memref<4x1xf32, #tpu.memory_space<vmem>>, %arg4: memref<32x4xbf16, #tpu.memory_space<vmem>>, %arg5: memref<32x1xf32, #tpu.memory_space<vmem>>, %arg6: memref<32x1xf32, #tpu.memory_space<vmem>>, %arg7: memref<8x288xbf16, #tpu.memory_space<vmem>>, %arg8: memref<9x256xf32, #tpu.memory_space<vmem>>, %arg9: memref<2x12x256xf32, #tpu.memory_space<vmem>>, %arg10: memref<288x256xbf16, #tpu.memory_space<vmem>>) attributes {dimension_semantics = [#tpu.dimension_semantics<parallel>], iteration_bounds = array<i64: 1>, scalar_prefetch = 0 : i64, scratch_operands = 1 : i64, tpu.core_type = #tpu.core_type<tc>, window_params = [{transform_indices = @transform_0, window_bounds = array<i64: 2, 4, 256>}, {pipeline_mode = #tpu.pipeline_mode<synchronous>, transform_indices = @transform_1, window_bounds = array<i64: 4, 1>}, {pipeline_mode = #tpu.pipeline_mode<synchronous>, transform_indices = @transform_2, window_bounds = array<i64: 4, 1>}, {pipeline_mode = #tpu.pipeline_mode<synchronous>, transform_indices = @transform_3, window_bounds = array<i64: 32, 4>}, {pipeline_mode = #tpu.pipeline_mode<synchronous>, transform_indices = @transform_4, window_bounds = array<i64: 32, 1>}, {pipeline_mode = #tpu.pipeline_mode<synchronous>, transform_indices = @transform_5, window_bounds = array<i64: 32, 1>}, {pipeline_mode = #tpu.pipeline_mode<synchronous>, transform_indices = @transform_6, window_bounds = array<i64: 8, 288>}, {pipeline_mode = #tpu.pipeline_mode<synchronous>, transform_indices = @transform_7, window_bounds = array<i64: 9, 256>}, {transform_indices = @transform_8, window_bounds = array<i64: 2, 12, 256>}]} {
    %c0 = arith.constant 0 : index
    %c0_0 = arith.constant 0 : index
    %0 = vector.load %arg2[%c0, %c0_0] : memref<4x1xf32, #tpu.memory_space<vmem>>, vector<4x1xf32>
    %c0_1 = arith.constant 0 : index
    %c0_2 = arith.constant 0 : index
    %1 = vector.load %arg3[%c0_1, %c0_2] : memref<4x1xf32, #tpu.memory_space<vmem>>, vector<4x1xf32>
    %c0_3 = arith.constant 0 : index
    %c0_4 = arith.constant 0 : index
    %2 = vector.load %arg4[%c0_3, %c0_4] : memref<32x4xbf16, #tpu.memory_space<vmem>>, vector<32x4xbf16>
    %c0_5 = arith.constant 0 : index
    %c0_6 = arith.constant 0 : index
    %3 = vector.load %arg5[%c0_5, %c0_6] : memref<32x1xf32, #tpu.memory_space<vmem>>, vector<32x1xf32>
    %c0_7 = arith.constant 0 : index
    %c0_8 = arith.constant 0 : index
    %4 = vector.load %arg6[%c0_7, %c0_8] : memref<32x1xf32, #tpu.memory_space<vmem>>, vector<32x1xf32>
    %c0_9 = arith.constant 0 : index
    %c0_10 = arith.constant 0 : index
    %5 = vector.load %arg7[%c0_9, %c0_10] : memref<8x288xbf16, #tpu.memory_space<vmem>>, vector<8x288xbf16>
    %c0_11 = arith.constant 0 : index
    %c0_12 = arith.constant 0 : index
    %c0_13 = arith.constant 0 : index
    %6 = vector.load %arg1[%c0_11, %c0_12, %c0_13] : memref<2x4x256xf32, #tpu.memory_space<vmem>>, vector<1x4x256xf32>
    %7 = vector.shape_cast %6 : vector<1x4x256xf32> to vector<4x256xf32>
    %8 = vector.broadcast %0 : vector<4x1xf32> to vector<4x256xf32>
    %9 = arith.mulf %7, %8 : vector<4x256xf32>
    %10 = vector.broadcast %1 : vector<4x1xf32> to vector<4x256xf32>
    %11 = arith.addf %9, %10 : vector<4x256xf32>
    %cst = arith.constant 0.000000e+00 : f32
    %12 = vector.broadcast %cst : f32 to vector<4x256xf32>
    %13 = arith.maximumf %11, %12 : vector<4x256xf32>
    %14 = arith.truncf %13 : vector<4x256xf32> to vector<4x256xbf16>
    %cst_14 = arith.constant dense<0.000000e+00> : vector<32x256xf32>
    %15 = tpu.matmul %2, %14, %cst_14 {dimension_numbers = #tpu.dot_dimension_numbers<[1], [0], [0], [1], [0, 0, 1, 1], [], []>} : vector<32x4xbf16>, vector<4x256xbf16>, vector<32x256xf32> -> vector<32x256xf32>
    %16 = vector.broadcast %3 : vector<32x1xf32> to vector<32x256xf32>
    %17 = arith.mulf %15, %16 : vector<32x256xf32>
    %18 = vector.broadcast %4 : vector<32x1xf32> to vector<32x256xf32>
    %19 = arith.addf %17, %18 : vector<32x256xf32>
    %cst_15 = arith.constant 0.000000e+00 : f32
    %20 = vector.broadcast %cst_15 : f32 to vector<32x256xf32>
    %21 = arith.maximumf %19, %20 : vector<32x256xf32>
    %c17_i32 = arith.constant 17 : i32
    %22 = tpu.dynamic_rotate %21 by %c17_i32 dim 1 : vector<32x256xf32>, i32 -> vector<32x256xf32>
    %c0_16 = arith.constant 0 : index
    %c0_17 = arith.constant 0 : index
    %23 = vector.load %arg8[%c0_16, %c0_17] : memref<9x256xf32, #tpu.memory_space<vmem>>, vector<1x256xf32>
    %24 = vector.broadcast %23 : vector<1x256xf32> to vector<32x256xf32>
    %25 = arith.mulf %22, %24 : vector<32x256xf32>
    %26 = arith.truncf %25 : vector<32x256xf32> to vector<32x256xbf16>
    %c0_18 = arith.constant 0 : index
    %c0_19 = arith.constant 0 : index
    %27 = vector.load %arg10[%c0_18, %c0_19] : memref<288x256xbf16, #tpu.memory_space<vmem>>, vector<32x256xbf16>
    tpu.vector_store %arg10[%c0_18, %c0_19], %26 {strides = array<i32>} : memref<288x256xbf16, #tpu.memory_space<vmem>>, vector<32x256xbf16>,
    %c16_i32 = arith.constant 16 : i32
    %28 = tpu.dynamic_rotate %21 by %c16_i32 dim 1 : vector<32x256xf32>, i32 -> vector<32x256xf32>
    %c1 = arith.constant 1 : index
    %c0_20 = arith.constant 0 : index
    %29 = vector.load %arg8[%c1, %c0_20] : memref<9x256xf32, #tpu.memory_space<vmem>>, vector<1x256xf32>
    %30 = vector.broadcast %29 : vector<1x256xf32> to vector<32x256xf32>
    %31 = arith.mulf %28, %30 : vector<32x256xf32>
    %32 = arith.truncf %31 : vector<32x256xf32> to vector<32x256xbf16>
    %c32 = arith.constant 32 : index
    %c0_21 = arith.constant 0 : index
    %33 = vector.load %arg10[%c32, %c0_21] : memref<288x256xbf16, #tpu.memory_space<vmem>>, vector<32x256xbf16>
    tpu.vector_store %arg10[%c32, %c0_21], %32 {strides = array<i32>} : memref<288x256xbf16, #tpu.memory_space<vmem>>, vector<32x256xbf16>,
    %c15_i32 = arith.constant 15 : i32
    %34 = tpu.dynamic_rotate %21 by %c15_i32 dim 1 : vector<32x256xf32>, i32 -> vector<32x256xf32>
    %c2 = arith.constant 2 : index
    %c0_22 = arith.constant 0 : index
    %35 = vector.load %arg8[%c2, %c0_22] : memref<9x256xf32, #tpu.memory_space<vmem>>, vector<1x256xf32>
    %36 = vector.broadcast %35 : vector<1x256xf32> to vector<32x256xf32>
    %37 = arith.mulf %34, %36 : vector<32x256xf32>
    %38 = arith.truncf %37 : vector<32x256xf32> to vector<32x256xbf16>
    %c64 = arith.constant 64 : index
    %c0_23 = arith.constant 0 : index
    %39 = vector.load %arg10[%c64, %c0_23] : memref<288x256xbf16, #tpu.memory_space<vmem>>, vector<32x256xbf16>
    tpu.vector_store %arg10[%c64, %c0_23], %38 {strides = array<i32>} : memref<288x256xbf16, #tpu.memory_space<vmem>>, vector<32x256xbf16>,
    %c1_i32 = arith.constant 1 : i32
    %40 = tpu.dynamic_rotate %21 by %c1_i32 dim 1 : vector<32x256xf32>, i32 -> vector<32x256xf32>
    %c3 = arith.constant 3 : index
    %c0_24 = arith.constant 0 : index
    %41 = vector.load %arg8[%c3, %c0_24] : memref<9x256xf32, #tpu.memory_space<vmem>>, vector<1x256xf32>
    %42 = vector.broadcast %41 : vector<1x256xf32> to vector<32x256xf32>
    %43 = arith.mulf %40, %42 : vector<32x256xf32>
    %44 = arith.truncf %43 : vector<32x256xf32> to vector<32x256xbf16>
    %c96 = arith.constant 96 : index
    %c0_25 = arith.constant 0 : index
    %45 = vector.load %arg10[%c96, %c0_25] : memref<288x256xbf16, #tpu.memory_space<vmem>>, vector<32x256xbf16>
    tpu.vector_store %arg10[%c96, %c0_25], %44 {strides = array<i32>} : memref<288x256xbf16, #tpu.memory_space<vmem>>, vector<32x256xbf16>,
    %c4 = arith.constant 4 : index
    %c0_26 = arith.constant 0 : index
    %46 = vector.load %arg8[%c4, %c0_26] : memref<9x256xf32, #tpu.memory_space<vmem>>, vector<1x256xf32>
    %47 = vector.broadcast %46 : vector<1x256xf32> to vector<32x256xf32>
    %48 = arith.mulf %21, %47 : vector<32x256xf32>
    %49 = arith.truncf %48 : vector<32x256xf32> to vector<32x256xbf16>
    %c128 = arith.constant 128 : index
    %c0_27 = arith.constant 0 : index
    %50 = vector.load %arg10[%c128, %c0_27] : memref<288x256xbf16, #tpu.memory_space<vmem>>, vector<32x256xbf16>
    tpu.vector_store %arg10[%c128, %c0_27], %49 {strides = array<i32>} : memref<288x256xbf16, #tpu.memory_space<vmem>>, vector<32x256xbf16>,
    %c255_i32 = arith.constant 255 : i32
    %51 = tpu.dynamic_rotate %21 by %c255_i32 dim 1 : vector<32x256xf32>, i32 -> vector<32x256xf32>
    %c5 = arith.constant 5 : index
    %c0_28 = arith.constant 0 : index
    %52 = vector.load %arg8[%c5, %c0_28] : memref<9x256xf32, #tpu.memory_space<vmem>>, vector<1x256xf32>
    %53 = vector.broadcast %52 : vector<1x256xf32> to vector<32x256xf32>
    %54 = arith.mulf %51, %53 : vector<32x256xf32>
    %55 = arith.truncf %54 : vector<32x256xf32> to vector<32x256xbf16>
    %c160 = arith.constant 160 : index
    %c0_29 = arith.constant 0 : index
    %56 = vector.load %arg10[%c160, %c0_29] : memref<288x256xbf16, #tpu.memory_space<vmem>>, vector<32x256xbf16>
    tpu.vector_store %arg10[%c160, %c0_29], %55 {strides = array<i32>} : memref<288x256xbf16, #tpu.memory_space<vmem>>, vector<32x256xbf16>,
    %c241_i32 = arith.constant 241 : i32
    %57 = tpu.dynamic_rotate %21 by %c241_i32 dim 1 : vector<32x256xf32>, i32 -> vector<32x256xf32>
    %c6 = arith.constant 6 : index
    %c0_30 = arith.constant 0 : index
    %58 = vector.load %arg8[%c6, %c0_30] : memref<9x256xf32, #tpu.memory_space<vmem>>, vector<1x256xf32>
    %59 = vector.broadcast %58 : vector<1x256xf32> to vector<32x256xf32>
    %60 = arith.mulf %57, %59 : vector<32x256xf32>
    %61 = arith.truncf %60 : vector<32x256xf32> to vector<32x256xbf16>
    %c192 = arith.constant 192 : index
    %c0_31 = arith.constant 0 : index
    %62 = vector.load %arg10[%c192, %c0_31] : memref<288x256xbf16, #tpu.memory_space<vmem>>, vector<32x256xbf16>
    tpu.vector_store %arg10[%c192, %c0_31], %61 {strides = array<i32>} : memref<288x256xbf16, #tpu.memory_space<vmem>>, vector<32x256xbf16>,
    %c240_i32 = arith.constant 240 : i32
    %63 = tpu.dynamic_rotate %21 by %c240_i32 dim 1 : vector<32x256xf32>, i32 -> vector<32x256xf32>
    %c7 = arith.constant 7 : index
    %c0_32 = arith.constant 0 : index
    %64 = vector.load %arg8[%c7, %c0_32] : memref<9x256xf32, #tpu.memory_space<vmem>>, vector<1x256xf32>
    %65 = vector.broadcast %64 : vector<1x256xf32> to vector<32x256xf32>
    %66 = arith.mulf %63, %65 : vector<32x256xf32>
    %67 = arith.truncf %66 : vector<32x256xf32> to vector<32x256xbf16>
    %c224 = arith.constant 224 : index
    %c0_33 = arith.constant 0 : index
    %68 = vector.load %arg10[%c224, %c0_33] : memref<288x256xbf16, #tpu.memory_space<vmem>>, vector<32x256xbf16>
    tpu.vector_store %arg10[%c224, %c0_33], %67 {strides = array<i32>} : memref<288x256xbf16, #tpu.memory_space<vmem>>, vector<32x256xbf16>,
    %c239_i32 = arith.constant 239 : i32
    %69 = tpu.dynamic_rotate %21 by %c239_i32 dim 1 : vector<32x256xf32>, i32 -> vector<32x256xf32>
    %c8 = arith.constant 8 : index
    %c0_34 = arith.constant 0 : index
    %70 = vector.load %arg8[%c8, %c0_34] : memref<9x256xf32, #tpu.memory_space<vmem>>, vector<1x256xf32>
    %71 = vector.broadcast %70 : vector<1x256xf32> to vector<32x256xf32>
    %72 = arith.mulf %69, %71 : vector<32x256xf32>
    %73 = arith.truncf %72 : vector<32x256xf32> to vector<32x256xbf16>
    %c256 = arith.constant 256 : index
    %c0_35 = arith.constant 0 : index
    %74 = vector.load %arg10[%c256, %c0_35] : memref<288x256xbf16, #tpu.memory_space<vmem>>, vector<32x256xbf16>
    tpu.vector_store %arg10[%c256, %c0_35], %73 {strides = array<i32>} : memref<288x256xbf16, #tpu.memory_space<vmem>>, vector<32x256xbf16>,
    %c0_36 = arith.constant 0 : index
    %c0_37 = arith.constant 0 : index
    %75 = vector.load %arg10[%c0_36, %c0_37] : memref<288x256xbf16, #tpu.memory_space<vmem>>, vector<288x256xbf16>
    %cst_38 = arith.constant dense<0.000000e+00> : vector<8x256xf32>
    %76 = tpu.matmul %5, %75, %cst_38 {dimension_numbers = #tpu.dot_dimension_numbers<[1], [0], [0], [1], [0, 0, 1, 1], [], []>} : vector<8x288xbf16>, vector<288x256xbf16>, vector<8x256xf32> -> vector<8x256xf32>
    %77 = tpu.concatenate %7, %76 in 0 : vector<4x256xf32>, vector<8x256xf32> -> vector<12x256xf32>
    %c0_39 = arith.constant 0 : index
    %c0_40 = arith.constant 0 : index
    %c0_41 = arith.constant 0 : index
    %78 = vector.load %arg9[%c0_39, %c0_40, %c0_41] : memref<2x12x256xf32, #tpu.memory_space<vmem>>, vector<1x12x256xf32>
    %79 = vector.shape_cast %78 : vector<1x12x256xf32> to vector<12x256xf32>
    %80 = vector.shape_cast %77 : vector<12x256xf32> to vector<1x12x256xf32>
    tpu.vector_store %arg9[%c0_39, %c0_40, %c0_41], %80 {strides = array<i32>} : memref<2x12x256xf32, #tpu.memory_space<vmem>>, vector<1x12x256xf32>,
    %c1_42 = arith.constant 1 : index
    %c0_43 = arith.constant 0 : index
    %c0_44 = arith.constant 0 : index
    %81 = vector.load %arg1[%c1_42, %c0_43, %c0_44] : memref<2x4x256xf32, #tpu.memory_space<vmem>>, vector<1x4x256xf32>
    %82 = vector.shape_cast %81 : vector<1x4x256xf32> to vector<4x256xf32>
    %83 = vector.broadcast %0 : vector<4x1xf32> to vector<4x256xf32>
    %84 = arith.mulf %82, %83 : vector<4x256xf32>
    %85 = vector.broadcast %1 : vector<4x1xf32> to vector<4x256xf32>
    %86 = arith.addf %84, %85 : vector<4x256xf32>
    %cst_45 = arith.constant 0.000000e+00 : f32
    %87 = vector.broadcast %cst_45 : f32 to vector<4x256xf32>
    %88 = arith.maximumf %86, %87 : vector<4x256xf32>
    %89 = arith.truncf %88 : vector<4x256xf32> to vector<4x256xbf16>
    %cst_46 = arith.constant dense<0.000000e+00> : vector<32x256xf32>
    %90 = tpu.matmul %2, %89, %cst_46 {dimension_numbers = #tpu.dot_dimension_numbers<[1], [0], [0], [1], [0, 0, 1, 1], [], []>} : vector<32x4xbf16>, vector<4x256xbf16>, vector<32x256xf32> -> vector<32x256xf32>
    %91 = vector.broadcast %3 : vector<32x1xf32> to vector<32x256xf32>
    %92 = arith.mulf %90, %91 : vector<32x256xf32>
    %93 = vector.broadcast %4 : vector<32x1xf32> to vector<32x256xf32>
    %94 = arith.addf %92, %93 : vector<32x256xf32>
    %cst_47 = arith.constant 0.000000e+00 : f32
    %95 = vector.broadcast %cst_47 : f32 to vector<32x256xf32>
    %96 = arith.maximumf %94, %95 : vector<32x256xf32>
    %c17_i32_48 = arith.constant 17 : i32
    %97 = tpu.dynamic_rotate %96 by %c17_i32_48 dim 1 : vector<32x256xf32>, i32 -> vector<32x256xf32>
    %c0_49 = arith.constant 0 : index
    %c0_50 = arith.constant 0 : index
    %98 = vector.load %arg8[%c0_49, %c0_50] : memref<9x256xf32, #tpu.memory_space<vmem>>, vector<1x256xf32>
    %99 = vector.broadcast %98 : vector<1x256xf32> to vector<32x256xf32>
    %100 = arith.mulf %97, %99 : vector<32x256xf32>
    %101 = arith.truncf %100 : vector<32x256xf32> to vector<32x256xbf16>
    %c0_51 = arith.constant 0 : index
    %c0_52 = arith.constant 0 : index
    %102 = vector.load %arg10[%c0_51, %c0_52] : memref<288x256xbf16, #tpu.memory_space<vmem>>, vector<32x256xbf16>
    tpu.vector_store %arg10[%c0_51, %c0_52], %101 {strides = array<i32>} : memref<288x256xbf16, #tpu.memory_space<vmem>>, vector<32x256xbf16>,
    %c16_i32_53 = arith.constant 16 : i32
    %103 = tpu.dynamic_rotate %96 by %c16_i32_53 dim 1 : vector<32x256xf32>, i32 -> vector<32x256xf32>
    %c1_54 = arith.constant 1 : index
    %c0_55 = arith.constant 0 : index
    %104 = vector.load %arg8[%c1_54, %c0_55] : memref<9x256xf32, #tpu.memory_space<vmem>>, vector<1x256xf32>
    %105 = vector.broadcast %104 : vector<1x256xf32> to vector<32x256xf32>
    %106 = arith.mulf %103, %105 : vector<32x256xf32>
    %107 = arith.truncf %106 : vector<32x256xf32> to vector<32x256xbf16>
    %c32_56 = arith.constant 32 : index
    %c0_57 = arith.constant 0 : index
    %108 = vector.load %arg10[%c32_56, %c0_57] : memref<288x256xbf16, #tpu.memory_space<vmem>>, vector<32x256xbf16>
    tpu.vector_store %arg10[%c32_56, %c0_57], %107 {strides = array<i32>} : memref<288x256xbf16, #tpu.memory_space<vmem>>, vector<32x256xbf16>,
    %c15_i32_58 = arith.constant 15 : i32
    %109 = tpu.dynamic_rotate %96 by %c15_i32_58 dim 1 : vector<32x256xf32>, i32 -> vector<32x256xf32>
    %c2_59 = arith.constant 2 : index
    %c0_60 = arith.constant 0 : index
    %110 = vector.load %arg8[%c2_59, %c0_60] : memref<9x256xf32, #tpu.memory_space<vmem>>, vector<1x256xf32>
    %111 = vector.broadcast %110 : vector<1x256xf32> to vector<32x256xf32>
    %112 = arith.mulf %109, %111 : vector<32x256xf32>
    %113 = arith.truncf %112 : vector<32x256xf32> to vector<32x256xbf16>
    %c64_61 = arith.constant 64 : index
    %c0_62 = arith.constant 0 : index
    %114 = vector.load %arg10[%c64_61, %c0_62] : memref<288x256xbf16, #tpu.memory_space<vmem>>, vector<32x256xbf16>
    tpu.vector_store %arg10[%c64_61, %c0_62], %113 {strides = array<i32>} : memref<288x256xbf16, #tpu.memory_space<vmem>>, vector<32x256xbf16>,
    %c1_i32_63 = arith.constant 1 : i32
    %115 = tpu.dynamic_rotate %96 by %c1_i32_63 dim 1 : vector<32x256xf32>, i32 -> vector<32x256xf32>
    %c3_64 = arith.constant 3 : index
    %c0_65 = arith.constant 0 : index
    %116 = vector.load %arg8[%c3_64, %c0_65] : memref<9x256xf32, #tpu.memory_space<vmem>>, vector<1x256xf32>
    %117 = vector.broadcast %116 : vector<1x256xf32> to vector<32x256xf32>
    %118 = arith.mulf %115, %117 : vector<32x256xf32>
    %119 = arith.truncf %118 : vector<32x256xf32> to vector<32x256xbf16>
    %c96_66 = arith.constant 96 : index
    %c0_67 = arith.constant 0 : index
    %120 = vector.load %arg10[%c96_66, %c0_67] : memref<288x256xbf16, #tpu.memory_space<vmem>>, vector<32x256xbf16>
    tpu.vector_store %arg10[%c96_66, %c0_67], %119 {strides = array<i32>} : memref<288x256xbf16, #tpu.memory_space<vmem>>, vector<32x256xbf16>,
    %c4_68 = arith.constant 4 : index
    %c0_69 = arith.constant 0 : index
    %121 = vector.load %arg8[%c4_68, %c0_69] : memref<9x256xf32, #tpu.memory_space<vmem>>, vector<1x256xf32>
    %122 = vector.broadcast %121 : vector<1x256xf32> to vector<32x256xf32>
    %123 = arith.mulf %96, %122 : vector<32x256xf32>
    %124 = arith.truncf %123 : vector<32x256xf32> to vector<32x256xbf16>
    %c128_70 = arith.constant 128 : index
    %c0_71 = arith.constant 0 : index
    %125 = vector.load %arg10[%c128_70, %c0_71] : memref<288x256xbf16, #tpu.memory_space<vmem>>, vector<32x256xbf16>
    tpu.vector_store %arg10[%c128_70, %c0_71], %124 {strides = array<i32>} : memref<288x256xbf16, #tpu.memory_space<vmem>>, vector<32x256xbf16>,
    %c255_i32_72 = arith.constant 255 : i32
    %126 = tpu.dynamic_rotate %96 by %c255_i32_72 dim 1 : vector<32x256xf32>, i32 -> vector<32x256xf32>
    %c5_73 = arith.constant 5 : index
    %c0_74 = arith.constant 0 : index
    %127 = vector.load %arg8[%c5_73, %c0_74] : memref<9x256xf32, #tpu.memory_space<vmem>>, vector<1x256xf32>
    %128 = vector.broadcast %127 : vector<1x256xf32> to vector<32x256xf32>
    %129 = arith.mulf %126, %128 : vector<32x256xf32>
    %130 = arith.truncf %129 : vector<32x256xf32> to vector<32x256xbf16>
    %c160_75 = arith.constant 160 : index
    %c0_76 = arith.constant 0 : index
    %131 = vector.load %arg10[%c160_75, %c0_76] : memref<288x256xbf16, #tpu.memory_space<vmem>>, vector<32x256xbf16>
    tpu.vector_store %arg10[%c160_75, %c0_76], %130 {strides = array<i32>} : memref<288x256xbf16, #tpu.memory_space<vmem>>, vector<32x256xbf16>,
    %c241_i32_77 = arith.constant 241 : i32
    %132 = tpu.dynamic_rotate %96 by %c241_i32_77 dim 1 : vector<32x256xf32>, i32 -> vector<32x256xf32>
    %c6_78 = arith.constant 6 : index
    %c0_79 = arith.constant 0 : index
    %133 = vector.load %arg8[%c6_78, %c0_79] : memref<9x256xf32, #tpu.memory_space<vmem>>, vector<1x256xf32>
    %134 = vector.broadcast %133 : vector<1x256xf32> to vector<32x256xf32>
    %135 = arith.mulf %132, %134 : vector<32x256xf32>
    %136 = arith.truncf %135 : vector<32x256xf32> to vector<32x256xbf16>
    %c192_80 = arith.constant 192 : index
    %c0_81 = arith.constant 0 : index
    %137 = vector.load %arg10[%c192_80, %c0_81] : memref<288x256xbf16, #tpu.memory_space<vmem>>, vector<32x256xbf16>
    tpu.vector_store %arg10[%c192_80, %c0_81], %136 {strides = array<i32>} : memref<288x256xbf16, #tpu.memory_space<vmem>>, vector<32x256xbf16>,
    %c240_i32_82 = arith.constant 240 : i32
    %138 = tpu.dynamic_rotate %96 by %c240_i32_82 dim 1 : vector<32x256xf32>, i32 -> vector<32x256xf32>
    %c7_83 = arith.constant 7 : index
    %c0_84 = arith.constant 0 : index
    %139 = vector.load %arg8[%c7_83, %c0_84] : memref<9x256xf32, #tpu.memory_space<vmem>>, vector<1x256xf32>
    %140 = vector.broadcast %139 : vector<1x256xf32> to vector<32x256xf32>
    %141 = arith.mulf %138, %140 : vector<32x256xf32>
    %142 = arith.truncf %141 : vector<32x256xf32> to vector<32x256xbf16>
    %c224_85 = arith.constant 224 : index
    %c0_86 = arith.constant 0 : index
    %143 = vector.load %arg10[%c224_85, %c0_86] : memref<288x256xbf16, #tpu.memory_space<vmem>>, vector<32x256xbf16>
    tpu.vector_store %arg10[%c224_85, %c0_86], %142 {strides = array<i32>} : memref<288x256xbf16, #tpu.memory_space<vmem>>, vector<32x256xbf16>,
    %c239_i32_87 = arith.constant 239 : i32
    %144 = tpu.dynamic_rotate %96 by %c239_i32_87 dim 1 : vector<32x256xf32>, i32 -> vector<32x256xf32>
    %c8_88 = arith.constant 8 : index
    %c0_89 = arith.constant 0 : index
    %145 = vector.load %arg8[%c8_88, %c0_89] : memref<9x256xf32, #tpu.memory_space<vmem>>, vector<1x256xf32>
    %146 = vector.broadcast %145 : vector<1x256xf32> to vector<32x256xf32>
    %147 = arith.mulf %144, %146 : vector<32x256xf32>
    %148 = arith.truncf %147 : vector<32x256xf32> to vector<32x256xbf16>
    %c256_90 = arith.constant 256 : index
    %c0_91 = arith.constant 0 : index
    %149 = vector.load %arg10[%c256_90, %c0_91] : memref<288x256xbf16, #tpu.memory_space<vmem>>, vector<32x256xbf16>
    tpu.vector_store %arg10[%c256_90, %c0_91], %148 {strides = array<i32>} : memref<288x256xbf16, #tpu.memory_space<vmem>>, vector<32x256xbf16>,
    %c0_92 = arith.constant 0 : index
    %c0_93 = arith.constant 0 : index
    %150 = vector.load %arg10[%c0_92, %c0_93] : memref<288x256xbf16, #tpu.memory_space<vmem>>, vector<288x256xbf16>
    %cst_94 = arith.constant dense<0.000000e+00> : vector<8x256xf32>
    %151 = tpu.matmul %5, %150, %cst_94 {dimension_numbers = #tpu.dot_dimension_numbers<[1], [0], [0], [1], [0, 0, 1, 1], [], []>} : vector<8x288xbf16>, vector<288x256xbf16>, vector<8x256xf32> -> vector<8x256xf32>
    %152 = tpu.concatenate %82, %151 in 0 : vector<4x256xf32>, vector<8x256xf32> -> vector<12x256xf32>
    %c1_95 = arith.constant 1 : index
    %c0_96 = arith.constant 0 : index
    %c0_97 = arith.constant 0 : index
    %153 = vector.load %arg9[%c1_95, %c0_96, %c0_97] : memref<2x12x256xf32, #tpu.memory_space<vmem>>, vector<1x12x256xf32>
    %154 = vector.shape_cast %153 : vector<1x12x256xf32> to vector<12x256xf32>
    %155 = vector.shape_cast %152 : vector<12x256xf32> to vector<1x12x256xf32>
    tpu.vector_store %arg9[%c1_95, %c0_96, %c0_97], %155 {strides = array<i32>} : memref<2x12x256xf32, #tpu.memory_space<vmem>>, vector<1x12x256xf32>,
    return
  }
  func.func @transform_0(%arg0: i32) -> (i32, i32, i32) {
    %c0_i32 = arith.constant 0 : i32
    %c0_i32_0 = arith.constant 0 : i32
    %c0_i32_1 = arith.constant 0 : i32
    return %arg0, %c0_i32, %c0_i32_0 : i32, i32, i32
  }
  func.func @transform_1(%arg0: i32) -> (i32, i32) {
    %c0_i32 = arith.constant 0 : i32
    %c0_i32_0 = arith.constant 0 : i32
    %c0_i32_1 = arith.constant 0 : i32
    return %c0_i32, %c0_i32_0 : i32, i32
  }
  func.func @transform_2(%arg0: i32) -> (i32, i32) {
    %c0_i32 = arith.constant 0 : i32
    %c0_i32_0 = arith.constant 0 : i32
    %c0_i32_1 = arith.constant 0 : i32
    return %c0_i32, %c0_i32_0 : i32, i32
  }
  func.func @transform_3(%arg0: i32) -> (i32, i32) {
    %c0_i32 = arith.constant 0 : i32
    %c0_i32_0 = arith.constant 0 : i32
    %c0_i32_1 = arith.constant 0 : i32
    return %c0_i32, %c0_i32_0 : i32, i32
  }
  func.func @transform_4(%arg0: i32) -> (i32, i32) {
    %c0_i32 = arith.constant 0 : i32
    %c0_i32_0 = arith.constant 0 : i32
    %c0_i32_1 = arith.constant 0 : i32
    return %c0_i32, %c0_i32_0 : i32, i32
  }
  func.func @transform_5(%arg0: i32) -> (i32, i32) {
    %c0_i32 = arith.constant 0 : i32
    %c0_i32_0 = arith.constant 0 : i32
    %c0_i32_1 = arith.constant 0 : i32
    return %c0_i32, %c0_i32_0 : i32, i32
  }
  func.func @transform_6(%arg0: i32) -> (i32, i32) {
    %c0_i32 = arith.constant 0 : i32
    %c0_i32_0 = arith.constant 0 : i32
    %c0_i32_1 = arith.constant 0 : i32
    return %c0_i32, %c0_i32_0 : i32, i32
  }
  func.func @transform_7(%arg0: i32) -> (i32, i32) {
    %c0_i32 = arith.constant 0 : i32
    %c0_i32_0 = arith.constant 0 : i32
    %c0_i32_1 = arith.constant 0 : i32
    return %c0_i32, %c0_i32_0 : i32, i32
  }
  func.func @transform_8(%arg0: i32) -> (i32, i32, i32) {
    %c0_i32 = arith.constant 0 : i32
    %c0_i32_0 = arith.constant 0 : i32
    %c0_i32_1 = arith.constant 0 : i32
    return %arg0, %c0_i32, %c0_i32_0 : i32, i32, i32
  }
}

</mosaic_0001>

<bundles_post_ra>
// kernel: densenet_bottleneck_pallas.1
= control target key start
LH: loop header
LB: loop body
LE: loop exit
PB: predicated region body
PF: predicated region fallthrough
CT: control target
= control target key end

     0   :  { %v3125_v0 = vmov 0   ;;  %v1571_v11 = vmov 839922192   ;;  %v54_v13 = vlaneseq  ;;  %vm96_vm0 = vcmask 1041408   ;;  %s1572_s30 = smov 17   ;;  %s1573_s11 = smov 16   ;;  %s3116_s1 = inlined_call_operand.vmem [shape: f32[4,1], index: 1, kind: input, shape index: {}]   ;;  %s3117_s2 = inlined_call_operand.vmem [shape: f32[4,1], index: 2, kind: input, shape index: {}]   ;;  %s3118_s5 = inlined_call_operand.vmem [shape: f32[32,1], index: 5, kind: input, shape index: {}]   ;;  %s3119_s4 = inlined_call_operand.vmem [shape: f32[32,1], index: 4, kind: input, shape index: {}]   ;;  %s3120_s3 = inlined_call_operand.vmem [shape: bf16[32,4], index: 3, kind: input, shape index: {}]   ;;  %s3121_s0 = inlined_call_operand.vmem [shape: f32[2,4,256], index: 0, kind: input, shape index: {}]   ;;  %s3122_s7 = inlined_call_operand.vmem [shape: f32[9,256], index: 7, kind: input, shape index: {}]   ;;  %s3123_s6 = inlined_call_operand.vmem [shape: bf16[8,288], index: 6, kind: input, shape index: {}]   ;;  %s3124_s8 = inlined_call_operand.vmem [shape: f32[2,12,256], index: 8, kind: output, shape index: {}]  }
   0x1   :  { %1557 = vset.pattern.permute.xlu0 %v3125_v0  ;;  %v30_v1 = vld [vmem:[%s3116_s1] sm:$0xf]  ;;  %135 = vmatprep.mubr.bf16.mxu1 %v3125_v0  ;;  %v38_v4 = vld [vmem:[%s3119_s4 + $0x10] sm:$0xff]  ;;  %v37_v7 = vld [vmem:[%s3119_s4 + $0x8] sm:$0xff]  ;;  %v52_v12 = vunpack.c.l.s4 %v1571_v11  ;;  %vm89_vm1 = vcmask 31744   ;;  %s1574_s12 = smov 15  }
   0x2   :  { %49 = vperm.xlu0 %1557, %v30_v1   ;;  %878 = vmatprep.mubr.bf16.mxu0 %v3125_v0  ;;  %v31_v2 = vld [vmem:[%s3117_s2] sm:$0xf]  ;;  %v42_v5 = vld [vmem:[%s3118_s5 + $0x10] sm:$0xff]  ;;  %v41_v8 = vld [vmem:[%s3118_s5 + $0x8] sm:$0xff]  ;;  %v1660_v15 = vshrl.u32 %v54_v13, 7  ;;  %s1575_s1 = smov 1  }
   0x3   :  { %1558 = vset.pattern.permute.xlu1 %v3125_v0  ;;  %v40_v3 = vld [vmem:[%s3118_s5] sm:$0xff]  ;;  %v39_v9 = vld [vmem:[%s3119_s4 + $0x18] sm:$0xff]  ;;  %v53_v14 = vunpack.c.0.s8 %v52_v12  ;;  %v1522_v20 = vld [vmem:[%s3121_s0 + $0x8] sm:$0xff]  ;;  %s1576_s13 = smov 127   ;;  %s1577_s14 = smov 113   ;;  %vm728_vm10 = vcmask 261120  }
   0x4   :  { %v36_v6 = vld [vmem:[%s3119_s4] sm:$0xff]  ;;  %v43_v10 = vld [vmem:[%s3118_s5 + $0x18] sm:$0xff]  ;;  %v1562_v38 = vld [vmem:[%s3120_s3 + $0x8] sm:$0xff]   ;;  %v1697_v55 = vsub.s32 0, %v1660_v15  ;;  %s1578_s2 = smov 112   ;;  %s1579_s15 = smov 111  }
   0x5   :  { %158 = vperm.xlu1 %1558, %v36_v6   ;;  %v56_v16 = vsub.s32 %v53_v14, %v1660_v15  ;;  %v46_v19 = vld [vmem:[%s3121_s0] sm:$0xff]  ;;  %vm823_vm11 = vcmask 1043456  }
   0x6   :  { %62 = vperm.xlu0 %1557, %v31_v2   ;;  %v1561_v37 = vld [vmem:[%s3120_s3] sm:$0xff]   ;;  %3234 = vst [vmem:[#allocation3_spill] sm:$0xff] %v1697_v55 }
   0x7   :  { %v1513_v61 = vld [vmem:[%s3122_s7 + $0x4] ss:$8 sm:$0x3] }
   0x8   :  { %v1529_v2 = vld [vmem:[%s3122_s7 + $0x4] ss:$8 sm:$0x3] }
   0x9   :  { %163 = vperm.xlu1 %1558, %v37_v7   ;;  %v1721_v7 = vrot.slane %v1513_v61, %v1697_v55  ;;  %v1736_v14 = vrot.slane %v1529_v2, %v1697_v55 }
   0xa   :  { %186 = vperm.xlu0 %1557, %v40_v3  }
   0xb   :  { %3235 = vst [vmem:[#allocation4_spill] sm:$0xff] %v1721_v7  ;;  %3237 = vst [vmem:[#allocation6_spill] sm:$0xff] %v1736_v14 }
   0xd   :  { %191 = vperm.xlu1 %1558, %v41_v8  }
   0xe   :  { %168 = vperm.xlu0 %1557, %v38_v4  }
  0x11   :  { %173 = vperm.xlu1 %1558, %v39_v9  }
  0x12   :  { %196 = vperm.xlu0 %1557, %v42_v5  }
  0x15   :  { %201 = vperm.xlu1 %1558, %v43_v10  }
  0x81   :  { %v50_v17 = vpop.permute.xlu0 %49 }
  0x82   :  { %v57_v18 = vrot.slane %v50_v17, %v56_v16 }
  0x84   :  { %v59_v22 = vmul.f32 %v57_v18, %v46_v19  ;;  %v832_v23 = vmul.f32 %v1522_v20, %v57_v18  ;;  %v1677_v39 = vpop.permute.xlu1 %158 }
  0x85   :  { %v63_v21 = vpop.permute.xlu0 %62 }
  0x86   :  { %v70_v24 = vrot.slane %v63_v21, %v56_v16 }
  0x88   :  { %v72_v25 = vadd.f32 %v70_v24, %v59_v22  ;;  %v833_v26 = vadd.f32 %v832_v23, %v70_v24  ;;  %v1679_v40 = vpop.permute.xlu1 %163 }
  0x89   :  { %v1681_v41 = vpop.permute.xlu0 %186 }
  0x8a   :  { %v73_v27 = vmax.f32 %v72_v25, 0.0  ;;  %v834_v28 = vmax.f32 %v833_v26, 0.0 }
  0x8c   :  { %v75_v29 = vcombine.high %v73_v27, %v73_v27  ;;  %v836_v30 = vcombine.high %v834_v28, %v834_v28  ;;  %v77_v31 = vpack.c.bf16 %v73_v27, %v73_v27  ;;  %v838_v32 = vpack.c.bf16 %v834_v28, %v834_v28  ;;  %v1699_v56 = vpop.permute.xlu1 %191 }
  0x8e   :  { %v78_v33 = vpack.c.bf16 %v75_v29, %v75_v29  ;;  %v839_v34 = vpack.c.bf16 %v836_v30, %v836_v30  ;;  %v98_v35 = vsel %vm96_vm0, %v77_v31, 0  ;;  %v841_v36 = vsel %vm96_vm0, %v838_v32, 0 }
  0x90   :  { %1507 = vmatprep.subr.msk.bf16.mxu1 %vm96_vm0, %v78_v33  ;;  %1523 = vmatprep.subr.msk.bf16.mxu0 %vm96_vm0, %v839_v34  ;;  %v1840_v33 = vpop.permute.xlu0 %168  ;;  %v1844_v34 = vpop.permute.xlu1 %173 }
  0x91   :  { %104 = vmatpush1.bf16.msra.mxu1 %v98_v35  ;;  %847 = vmatpush1.bf16.msra.mxu0 %v841_v36 }
  0x94   :  { %1508 = vmatmul.mubr.msk.bf16.vlgmr.msra.gmra.mrb[0].mxu1 %vm89_vm1, %v1561_v37  ;;  %1524 = vmatmul.mubr.msk.bf16.vlgmr.msra.gmra.mrb[0].mxu0 %vm89_vm1, %v1561_v37  ;;  %v1850_v35 = vpop.permute.xlu0 %196  ;;  %v1854_v36 = vpop.permute.xlu1 %201 }
  0x95   :  { %145 = vmatprep.mubr.bf16.mxu1 %v3125_v0  ;;  %888 = vmatprep.mubr.bf16.mxu0 %v3125_v0 }
  0x9c   :  { %1509 = vmatmul.mubr.msk.bf16.gmra.mrb[4].mxu1 %vm89_vm1, %v1562_v38  ;;  %1525 = vmatmul.mubr.msk.bf16.gmra.mrb[4].mxu0 %vm89_vm1, %v1562_v38 }
 0x167   :  { %v137_v42 = vpop.f32.mrb[0].mxu1  ;;  %v880_v43 = vpop.f32.mrb[0].mxu0 }
 0x168   :  { %v176_v44 = vmul.f32 %v1677_v39, %v137_v42  ;;  %v899_v45 = vmul.f32 %v880_v43, %v1677_v39  ;;  %v1685_v46 = vpop.f32.mrb[1].mxu1  ;;  %v1687_v47 = vpop.f32.mrb[1].mxu0 }
 0x169   :  { %v141_v48 = vpop.f32.mrb[2].mxu1  ;;  %v884_v49 = vpop.f32.mrb[2].mxu0  ;;  %v177_v21 = vmul.f32 %v1677_v39, %v1685_v46  ;;  %v900_v24 = vmul.f32 %v1687_v47, %v1677_v39 }
 0x16a   :  { %v204_v50 = vadd.f32 %v1681_v41, %v176_v44  ;;  %v178_v51 = vmul.f32 %v1679_v40, %v141_v48  ;;  %v901_v52 = vmul.f32 %v884_v49, %v1679_v40  ;;  %v1692_v53 = vpop.f32.mrb[3].mxu1  ;;  %v1694_v54 = vpop.f32.mrb[3].mxu0  ;;  %v907_v58 = vadd.f32 %v899_v45, %v1681_v41 }
 0x16b   :  { %v179_v22 = vmul.f32 %v1679_v40, %v1692_v53  ;;  %v205_v23 = vadd.f32 %v1681_v41, %v177_v21  ;;  %v902_v26 = vmul.f32 %v1694_v54, %v1679_v40  ;;  %v908_v28 = vadd.f32 %v900_v24, %v1681_v41 }
 0x16c   :  { %v212_v57 = vmax.f32 %v204_v50, 0.0  ;;  %v206_v59 = vadd.f32 %v1699_v56, %v178_v51  ;;  %v909_v60 = vadd.f32 %v901_v52, %v1699_v56  ;;  %v915_v3 = vmax.f32 %v907_v58, 0.0 }
 0x16d   :  { %v207_v25 = vadd.f32 %v1699_v56, %v179_v22  ;;  %v1789_v27 = vmax.f32 %v205_v23, 0.0  ;;  %v910_v30 = vadd.f32 %v902_v26, %v1699_v56  ;;  %v1798_v31 = vmax.f32 %v908_v28, 0.0 }
 0x16e   :  { %v214_v62 = vmax.f32 %v206_v59, 0.0  ;;  %220 = vrot.lane.b32.xlu0 %v212_v57, %s1572_s30  ;;  %v917_v4 = vmax.f32 %v909_v60, 0.0  ;;  %v1740_v16 = vmul.f32 %v1721_v7, %v212_v57  ;;  %v1749_v19 = vmul.f32 %v1736_v14, %v915_v3 }
 0x16f   :  { %v1708_v63 = vpop.f32.mrb[4].mxu1  ;;  %v1710_v1 = vpop.f32.mrb[4].mxu0  ;;  %3241 = vst [vmem:[#allocation10_spill] sm:$0xff] %v1789_v27  ;;  %v1793_v29 = vmax.f32 %v207_v25, 0.0  ;;  %3243 = vst [vmem:[#allocation12_spill] sm:$0xff] %v1798_v31  ;;  %v1802_v32 = vmax.f32 %v910_v30, 0.0 }
 0x170   :  { %v1715_v5 = vpop.f32.mrb[5].mxu0  ;;  %222 = vrot.lane.b32.xlu1 %v214_v62, %s1572_s30  ;;  %v1718_v6 = vpop.f32.mrb[5].mxu1  ;;  %v1733_v12 = vmul.f32 %v1721_v7, %v214_v62  ;;  %3238 = vst [vmem:[#allocation7_spill] sm:$0xff] %v1740_v16  ;;  %v1743_v17 = vmul.f32 %v1736_v14, %v917_v4  ;;  %3240 = vst [vmem:[#allocation9_spill] sm:$0xff] %v1749_v19  ;;  %v180_v37 = vmul.f32 %v1840_v33, %v1708_v63 }
 0x171   :  { %v1723_v8 = vpop.f32.mrb[6].mxu1  ;;  %v1725_v9 = vpop.f32.mrb[6].mxu0  ;;  %3242 = vst [vmem:[#allocation11_spill] sm:$0xff] %v1793_v29  ;;  %v903_v42 = vmul.f32 %v1710_v1, %v1840_v33 }
 0x172   :  { %v1727_v10 = vpop.f32.mrb[7].mxu0  ;;  %923 = vrot.lane.b32.xlu0 %v915_v3, %s1572_s30  ;;  %v1730_v11 = vpop.f32.mrb[7].mxu1  ;;  %3236 = vst [vmem:[#allocation5_spill] sm:$0xff] %v1733_v12  ;;  %3239 = vst [vmem:[#allocation8_spill] sm:$0xff] %v1743_v17  ;;  %v182_v39 = vmul.f32 %v1844_v34, %v1723_v8  ;;  %v208_v41 = vadd.f32 %v1850_v35, %v180_v37  ;;  %v905_v45 = vmul.f32 %v1725_v9, %v1844_v34 }
 0x173   :  { %v911_v48 = vadd.f32 %v903_v42, %v1850_v35  ;;  %v181_v37 = vmul.f32 %v1840_v33, %v1718_v6  ;;  %v904_v42 = vmul.f32 %v1715_v5, %v1840_v33  ;;  %v247_v5 = vld [vmem:[%s3122_s7] ss:$8 sm:$0x3] }
 0x174   :  { %925 = vrot.lane.b32.xlu1 %v917_v4, %s1572_s30  ;;  %v210_v44 = vadd.f32 %v1854_v36, %v182_v39  ;;  %v1884_v47 = vmax.f32 %v208_v41, 0.0  ;;  %v913_v51 = vadd.f32 %v905_v45, %v1854_v36  ;;  %v1997_v41 = vand.u32 127, %v54_v13 }
 0x175   :  { %v1898_v53 = vmax.f32 %v911_v48, 0.0  ;;  %v209_v6 = vadd.f32 %v1850_v35, %v181_v37  ;;  %v906_v13 = vmul.f32 %v1727_v10, %v1844_v34  ;;  %v912_v33 = vadd.f32 %v904_v42, %v1850_v35  ;;  %v947_v35 = vld [vmem:[%s3122_s7] ss:$8 sm:$0x3] }
 0x176   :  { %275 = vrot.lane.b32.xlu0 %v212_v57, %s1573_s11  ;;  %v1891_v50 = vmax.f32 %v210_v44, 0.0  ;;  %v1904_v56 = vmax.f32 %v913_v51, 0.0  ;;  %v183_v44 = vmul.f32 %v1844_v34, %v1730_v11  ;;  %v2018_v11 = vsub.s32 1, %v1660_v15 }
 0x177   :  { %3244 = vst [vmem:[#allocation13_spill] sm:$0xff] %v1898_v53  ;;  %vm238_vm2 = vcmp.lt.s32.totalorder %v1997_v41, 17  ;;  %v2027_v0 = vmax.f32 %v209_v6, 0.0  ;;  %v2030_v10 = vrot.slane %v247_v5, %v1697_v55  ;;  %v914_v42 = vadd.f32 %v906_v13, %v1854_v36 }
 0x178   :  { %277 = vrot.lane.b32.xlu1 %v214_v62, %s1573_s11  ;;  %3245 = vst [vmem:[#allocation14_spill] sm:$0xff] %v1904_v56  ;;  %v211_v51 = vadd.f32 %v1854_v36, %v183_v44  ;;  %v2033_v34 = vrot.slane %v247_v5, %v2018_v11  ;;  %v2047_v5 = vmax.f32 %v912_v33, 0.0  ;;  %v1510_v33 = vld [vmem:[%s3122_s7 + $0x1] ss:$8 sm:$0x3]  ;;  %vm291_vm3 = vcmp.lt.s32.totalorder %v1997_v41, 16 }
 0x179   :  { %vm345_vm4 = vcmp.lt.s32.totalorder %v1997_v41, 15  ;;  %vm399_vm5 = vcmp.lt.s32.totalorder %v1997_v41, 1  ;;  %vm482_vm6 = vcmp.lt.s32.totalorder %v1997_v41, 127  ;;  %vm536_vm7 = vcmp.lt.s32.totalorder %v1997_v41, 113 }
 0x17a   :  { %975 = vrot.lane.b32.xlu0 %v915_v3, %s1573_s11  ;;  %v2049_v20 = vmax.f32 %v211_v51, 0.0  ;;  %vm590_vm8 = vcmp.lt.s32.totalorder %v1997_v41, 112  ;;  %vm644_vm9 = vcmp.lt.s32.totalorder %v1997_v41, 111  ;;  %v1568_v41 = vld [vmem:[%s3121_s0] sm:$0xff] }
 0x17c   :  { %977 = vrot.lane.b32.xlu1 %v917_v4, %s1573_s11 }
 0x17e   :  { %329 = vrot.lane.b32.xlu0 %v212_v57, %s1574_s12 }
 0x180   :  { %331 = vrot.lane.b32.xlu1 %v214_v62, %s1574_s12 }
 0x182   :  { %1027 = vrot.lane.b32.xlu0 %v915_v3, %s1574_s12 }
 0x184   :  { %1029 = vrot.lane.b32.xlu1 %v917_v4, %s1574_s12 }
 0x186   :  { %383 = vrot.lane.b32.xlu0 %v212_v57, %s1575_s1 }
 0x188   :  { %385 = vrot.lane.b32.xlu1 %v214_v62, %s1575_s1 }
 0x18a   :  { %1079 = vrot.lane.b32.xlu0 %v915_v3, %s1575_s1 }
 0x18c   :  { %1081 = vrot.lane.b32.xlu1 %v917_v4, %s1575_s1 }
 0x18e   :  { %466 = vrot.lane.b32.xlu0 %v212_v57, %s1576_s13 }
 0x190   :  { %468 = vrot.lane.b32.xlu1 %v214_v62, %s1576_s13 }
 0x192   :  { %1159 = vrot.lane.b32.xlu0 %v915_v3, %s1576_s13 }
 0x194   :  { %1161 = vrot.lane.b32.xlu1 %v917_v4, %s1576_s13 }
 0x196   :  { %520 = vrot.lane.b32.xlu0 %v212_v57, %s1577_s14 }
 0x198   :  { %522 = vrot.lane.b32.xlu1 %v214_v62, %s1577_s14 }
 0x19a   :  { %1211 = vrot.lane.b32.xlu0 %v915_v3, %s1577_s14 }
 0x19c   :  { %1213 = vrot.lane.b32.xlu1 %v917_v4, %s1577_s14 }
 0x19e   :  { %574 = vrot.lane.b32.xlu0 %v212_v57, %s1578_s2 }
 0x1a0   :  { %576 = vrot.lane.b32.xlu1 %v214_v62, %s1578_s2 }
 0x1a2   :  { %1263 = vrot.lane.b32.xlu0 %v915_v3, %s1578_s2 }
 0x1a4   :  { %1265 = vrot.lane.b32.xlu1 %v917_v4, %s1578_s2 }
 0x1a6   :  { %628 = vrot.lane.b32.xlu0 %v212_v57, %s1579_s15 }
 0x1a8   :  { %630 = vrot.lane.b32.xlu1 %v214_v62, %s1579_s15 }
 0x1aa   :  { %1315 = vrot.lane.b32.xlu0 %v915_v3, %s1579_s15 }
 0x1ac   :  { %1317 = vrot.lane.b32.xlu1 %v917_v4, %s1579_s15 }
 0x1ae   :  { %228 = vrot.lane.b32.xlu0 %v1789_v27, %s1572_s30 }
 0x1b0   :  { %230 = vrot.lane.b32.xlu1 %v1793_v29, %s1572_s30 }
 0x1b2   :  { %931 = vrot.lane.b32.xlu0 %v1798_v31, %s1572_s30 }
 0x1b4   :  { %933 = vrot.lane.b32.xlu1 %v1802_v32, %s1572_s30 }
 0x1b6   :  { %283 = vrot.lane.b32.xlu0 %v1789_v27, %s1573_s11 }
 0x1b8   :  { %285 = vrot.lane.b32.xlu1 %v1793_v29, %s1573_s11 }
 0x1ba   :  { %983 = vrot.lane.b32.xlu0 %v1798_v31, %s1573_s11 }
 0x1bc   :  { %985 = vrot.lane.b32.xlu1 %v1802_v32, %s1573_s11 }
 0x1be   :  { %337 = vrot.lane.b32.xlu0 %v1789_v27, %s1574_s12 }
 0x1c0   :  { %339 = vrot.lane.b32.xlu1 %v1793_v29, %s1574_s12 }
 0x1c2   :  { %1035 = vrot.lane.b32.xlu0 %v1798_v31, %s1574_s12 }
 0x1c4   :  { %1037 = vrot.lane.b32.xlu1 %v1802_v32, %s1574_s12 }
 0x1c6   :  { %391 = vrot.lane.b32.xlu0 %v1789_v27, %s1575_s1 }
 0x1c8   :  { %393 = vrot.lane.b32.xlu1 %v1793_v29, %s1575_s1 }
 0x1ca   :  { %1087 = vrot.lane.b32.xlu0 %v1798_v31, %s1575_s1 }
 0x1cc   :  { %1089 = vrot.lane.b32.xlu1 %v1802_v32, %s1575_s1 }
 0x1ce   :  { %474 = vrot.lane.b32.xlu0 %v1789_v27, %s1576_s13 }
 0x1d0   :  { %476 = vrot.lane.b32.xlu1 %v1793_v29, %s1576_s13 }
 0x1d2   :  { %1167 = vrot.lane.b32.xlu0 %v1798_v31, %s1576_s13 }
 0x1d4   :  { %1169 = vrot.lane.b32.xlu1 %v1802_v32, %s1576_s13 }
 0x1d6   :  { %528 = vrot.lane.b32.xlu0 %v1789_v27, %s1577_s14 }
 0x1d8   :  { %530 = vrot.lane.b32.xlu1 %v1793_v29, %s1577_s14 }
 0x1da   :  { %1219 = vrot.lane.b32.xlu0 %v1798_v31, %s1577_s14 }
 0x1dc   :  { %1221 = vrot.lane.b32.xlu1 %v1802_v32, %s1577_s14 }
 0x1de   :  { %582 = vrot.lane.b32.xlu0 %v1789_v27, %s1578_s2 }
 0x1e0   :  { %v1860_v38 = vpop.permute.xlu0 %220  ;;  %584 = vrot.lane.b32.xlu1 %v1793_v29, %s1578_s2 }
 0x1e2   :  { %1271 = vrot.lane.b32.xlu0 %v1798_v31, %s1578_s2  ;;  %v1868_v40 = vpop.permute.xlu1 %222 }
 0x1e4   :  { %v1873_v43 = vpop.permute.xlu0 %923  ;;  %1273 = vrot.lane.b32.xlu1 %v1802_v32, %s1578_s2 }
 0x1e6   :  { %636 = vrot.lane.b32.xlu0 %v1789_v27, %s1579_s15  ;;  %v1882_v46 = vpop.permute.xlu1 %925 }
 0x1e8   :  { %v1887_v49 = vpop.permute.xlu0 %275  ;;  %638 = vrot.lane.b32.xlu1 %v1793_v29, %s1579_s15 }
 0x1ea   :  { %v1894_v52 = vpop.permute.xlu1 %277  ;;  %224 = vrot.lane.b32.xlu0 %v1884_v47, %s1572_s30 }
 0x1ec   :  { %v1900_v54 = vpop.permute.xlu0 %975  ;;  %226 = vrot.lane.b32.xlu1 %v1891_v50, %s1572_s30 }
 0x1ee   :  { %v1906_v57 = vpop.permute.xlu1 %977  ;;  %927 = vrot.lane.b32.xlu0 %v1898_v53, %s1572_s30 }
 0x1f0   :  { %v1910_v58 = vpop.permute.xlu0 %329  ;;  %929 = vrot.lane.b32.xlu1 %v1904_v56, %s1572_s30 }
 0x1f2   :  { %v1914_v59 = vpop.permute.xlu1 %331  ;;  %279 = vrot.lane.b32.xlu0 %v1884_v47, %s1573_s11 }
 0x1f4   :  { %v1918_v60 = vpop.permute.xlu0 %1027  ;;  %281 = vrot.lane.b32.xlu1 %v1891_v50, %s1573_s11 }
 0x1f6   :  { %v1922_v61 = vpop.permute.xlu1 %1029  ;;  %979 = vrot.lane.b32.xlu0 %v1898_v53, %s1573_s11 }
 0x1f8   :  { %v1926_v62 = vpop.permute.xlu0 %383  ;;  %981 = vrot.lane.b32.xlu1 %v1904_v56, %s1573_s11 }
 0x1fa   :  { %v1930_v63 = vpop.permute.xlu1 %385  ;;  %333 = vrot.lane.b32.xlu0 %v1884_v47, %s1574_s12 }
 0x1fc   :  { %v1934_v1 = vpop.permute.xlu0 %1079  ;;  %335 = vrot.lane.b32.xlu1 %v1891_v50, %s1574_s12 }
 0x1fe   :  { %v1938_v2 = vpop.permute.xlu1 %1081  ;;  %1031 = vrot.lane.b32.xlu0 %v1898_v53, %s1574_s12 }
 0x200   :  { %v1942_v3 = vpop.permute.xlu0 %466  ;;  %1033 = vrot.lane.b32.xlu1 %v1904_v56, %s1574_s12 }
 0x202   :  { %v1946_v4 = vpop.permute.xlu1 %468  ;;  %387 = vrot.lane.b32.xlu0 %v1884_v47, %s1575_s1 }
 0x204   :  { %v1950_v8 = vpop.permute.xlu0 %1159  ;;  %389 = vrot.lane.b32.xlu1 %v1891_v50, %s1575_s1 }
 0x206   :  { %v1954_v9 = vpop.permute.xlu1 %1161  ;;  %1083 = vrot.lane.b32.xlu0 %v1898_v53, %s1575_s1 }
 0x208   :  { %v1958_v21 = vpop.permute.xlu0 %520  ;;  %1085 = vrot.lane.b32.xlu1 %v1904_v56, %s1575_s1 }
 0x20a   :  { %v1962_v22 = vpop.permute.xlu1 %522  ;;  %470 = vrot.lane.b32.xlu0 %v1884_v47, %s1576_s13 }
 0x20c   :  { %v1966_v23 = vpop.permute.xlu0 %1211  ;;  %472 = vrot.lane.b32.xlu1 %v1891_v50, %s1576_s13 }
 0x20e   :  { %v1970_v24 = vpop.permute.xlu1 %1213  ;;  %1163 = vrot.lane.b32.xlu0 %v1898_v53, %s1576_s13 }
 0x210   :  { %v1974_v25 = vpop.permute.xlu0 %574  ;;  %1165 = vrot.lane.b32.xlu1 %v1904_v56, %s1576_s13 }
 0x212   :  { %v1978_v26 = vpop.permute.xlu1 %576  ;;  %524 = vrot.lane.b32.xlu0 %v1884_v47, %s1577_s14 }
 0x214   :  { %v1982_v28 = vpop.permute.xlu0 %1263  ;;  %526 = vrot.lane.b32.xlu1 %v1891_v50, %s1577_s14 }
 0x216   :  { %v1986_v30 = vpop.permute.xlu1 %1265  ;;  %1215 = vrot.lane.b32.xlu0 %v1898_v53, %s1577_s14 }
 0x218   :  { %v1992_v39 = vpop.permute.xlu0 %628  ;;  %1217 = vrot.lane.b32.xlu1 %v1904_v56, %s1577_s14 }
 0x21a   :  { %v2003_v45 = vpop.permute.xlu1 %630  ;;  %578 = vrot.lane.b32.xlu0 %v1884_v47, %s1578_s2 }
 0x21c   :  { %v2008_v48 = vpop.permute.xlu0 %1315  ;;  %580 = vrot.lane.b32.xlu1 %v1891_v50, %s1578_s2 }
 0x21d   :  { %3246 = vst [vmem:[#allocation15_spill] sm:$0xff] %v2008_v48  ;;  %v2060_v48 = vrot.slane %v947_v35, %v1697_v55 }
 0x21e   :  { %v2022_v37 = vpop.permute.xlu1 %1317  ;;  %1267 = vrot.lane.b32.xlu0 %v1898_v53, %s1578_s2 }
 0x21f   :  { %3247 = vst [vmem:[#allocation16_spill] sm:$0xff] %v2022_v37 }
 0x220   :  { %v229_v15 = vpop.permute.xlu0 %228  ;;  %1269 = vrot.lane.b32.xlu1 %v1904_v56, %s1578_s2 }
 0x221   :  { %v239_v44 = vsel %vm238_vm2, %v1860_v38, %v229_v15  ;;  %v243_v6 = vsel %vm238_vm2, %v229_v15, %v1860_v38  ;;  %v2063_v38 = vrot.slane %v947_v35, %v2018_v11 }
 0x222   :  { %v231_v18 = vpop.permute.xlu1 %230  ;;  %232 = vrot.lane.b32.xlu0 %v2027_v0, %s1572_s30  ;;  %v259_v51 = vmul.f32 %v2030_v10, %v243_v6  ;;  %v260_v15 = vmul.f32 %v2033_v34, %v239_v44 }
 0x223   :  { %v240_v36 = vsel %vm238_vm2, %v1868_v40, %v231_v18  ;;  %v244_v13 = vsel %vm238_vm2, %v231_v18, %v1868_v40  ;;  %v2074_v18 = vmax.f32 %v914_v42, 0.0 }
 0x224   :  { %v261_v37 = vmul.f32 %v2030_v10, %v244_v13  ;;  %v262_v19 = vmul.f32 %v2033_v34, %v240_v36  ;;  %v932_v17 = vpop.permute.xlu0 %931  ;;  %234 = vrot.lane.b32.xlu1 %v2049_v20, %s1572_s30  ;;  %v2086_v36 = vrot.slane %v1510_v33, %v1697_v55 }
 0x225   :  { %v939_v40 = vsel %vm238_vm2, %v1873_v43, %v932_v17  ;;  %v943_v35 = vsel %vm238_vm2, %v932_v17, %v1873_v43  ;;  %v2096_v43 = vrot.slane %v1510_v33, %v2018_v11 }
 0x226   :  { %v267_v6 = vpack.c.bf16 %v261_v37, %v259_v51  ;;  %v934_v44 = vpop.permute.xlu1 %933  ;;  %935 = vrot.lane.b32.xlu0 %v2047_v5, %s1572_s30  ;;  %v268_v42 = vpack.c.bf16 %v262_v19, %v260_v15  ;;  %v959_v13 = vmul.f32 %v2060_v48, %v943_v35  ;;  %v1526_v37 = vld [vmem:[%s3122_s7 + $0x1] ss:$8 sm:$0x3]  ;;  %v960_v51 = vmul.f32 %v2063_v38, %v939_v40 }
 0x227   :  { %v940_v14 = vsel %vm238_vm2, %v1882_v46, %v934_v44  ;;  %v944_v17 = vsel %vm238_vm2, %v934_v44, %v1882_v46 }
 0x228   :  { %v961_v19 = vmul.f32 %v2060_v48, %v944_v17  ;;  %v962_v15 = vmul.f32 %v2063_v38, %v940_v14  ;;  %v284_v35 = vpop.permute.xlu0 %283  ;;  %732 = vmatprep.subr.bf16.mxu1 %v268_v42  ;;  %937 = vrot.lane.b32.xlu1 %v2074_v18, %s1572_s30  ;;  %v2115_v14 = vrot.slane %v1526_v37, %v1697_v55 }
 0x229   :  { %v292_v46 = vsel %vm291_vm3, %v1887_v49, %v284_v35  ;;  %v296_v33 = vsel %vm291_vm3, %v284_v35, %v1887_v49  ;;  %733 = vmatpush1.bf16.msra.mxu1 %v267_v6  ;;  %v2127_v6 = vrot.slane %v1526_v37, %v2018_v11 }
 0x22a   :  { %v967_v44 = vpack.c.bf16 %v961_v19, %v959_v13  ;;  %v286_v40 = vpop.permute.xlu1 %285  ;;  %287 = vrot.lane.b32.xlu0 %v2027_v0, %s1573_s11  ;;  %v968_v42 = vpack.c.bf16 %v962_v15, %v960_v51  ;;  %v2118_v17 = vmul.f32 %v2086_v36, %v296_v33  ;;  %v2130_v13 = vmul.f32 %v2096_v43, %v292_v46 }
 0x22b   :  { %v293_v16 = vsel %vm291_vm3, %v1894_v52, %v286_v40  ;;  %v297_v49 = vsel %vm291_vm3, %v286_v40, %v1894_v52  ;;  %v1511_v52 = vld [vmem:[%s3122_s7 + $0x2] ss:$8 sm:$0x3] }
 0x22c   :  { %v2133_v19 = vmul.f32 %v2086_v36, %v297_v49  ;;  %v2136_v51 = vmul.f32 %v2096_v43, %v293_v16  ;;  %v984_v15 = vpop.permute.xlu0 %983  ;;  %1403 = vmatprep.subr.bf16.mxu0 %v968_v42  ;;  %289 = vrot.lane.b32.xlu1 %v2049_v20, %s1573_s11  ;;  %v2166_v42 = vrot.slane %v1511_v52, %v2018_v11 }
 0x22d   :  { %v991_v37 = vsel %vm291_vm3, %v1900_v54, %v984_v15  ;;  %v995_v35 = vsel %vm291_vm3, %v984_v15, %v1900_v54  ;;  %1404 = vmatpush1.bf16.msra.mxu0 %v967_v44  ;;  %v2163_v44 = vrot.slane %v1511_v52, %v1697_v55 }
 0x22e   :  { %v986_v46 = vpop.permute.xlu1 %985  ;;  %987 = vrot.lane.b32.xlu0 %v2047_v5, %s1573_s11  ;;  %3249 = vst [vmem:[#allocation18_spill] sm:$0xff] %v2166_v42  ;;  %v2169_v49 = vmul.f32 %v2115_v14, %v995_v35  ;;  %v2172_v15 = vmul.f32 %v2127_v6, %v991_v37 }
 0x22f   :  { %v992_v40 = vsel %vm291_vm3, %v1906_v57, %v986_v46  ;;  %v996_v54 = vsel %vm291_vm3, %v986_v46, %v1906_v57  ;;  %3248 = vst [vmem:[#allocation17_spill] sm:$0xff] %v2163_v44  ;;  %v1527_v57 = vld [vmem:[%s3122_s7 + $0x2] ss:$8 sm:$0x3] }
 0x230   :  { %3250 = vst [vmem:[#allocation19_spill] sm:$0xff] %v2169_v49  ;;  %v2175_v16 = vmul.f32 %v2115_v14, %v996_v54  ;;  %v2178_v33 = vmul.f32 %v2127_v6, %v992_v40  ;;  %v338_v12 = vpop.permute.xlu0 %337  ;;  %989 = vrot.lane.b32.xlu1 %v2074_v18, %s1573_s11 }
 0x231   :  { %v346_v52 = vsel %vm345_vm4, %v1910_v58, %v338_v12  ;;  %v350_v37 = vsel %vm345_vm4, %v338_v12, %v1910_v58  ;;  %v2204_v12 = vrot.slane %v1527_v57, %v1697_v55  ;;  %v2207_v58 = vrot.slane %v1527_v57, %v2018_v11 }
 0x232   :  { %v340_v46 = vpop.permute.xlu1 %339  ;;  %341 = vrot.lane.b32.xlu0 %v2027_v0, %s1574_s12  ;;  %v2210_v35 = vmul.f32 %v2163_v44, %v350_v37  ;;  %v2213_v27 = vmul.f32 %v2166_v42, %v346_v52 }
 0x233   :  { %v347_v54 = vsel %vm345_vm4, %v1914_v59, %v340_v46  ;;  %v351_v7 = vsel %vm345_vm4, %v340_v46, %v1914_v59  ;;  %3251 = vst [vmem:[#allocation20_spill] sm:$0xff] %v2204_v12  ;;  %3252 = vst [vmem:[#allocation21_spill] sm:$0xff] %v2207_v58  ;;  %v1512_v59 = vld [vmem:[%s3122_s7 + $0x3] ss:$8 sm:$0x3] }
 0x234   :  { %3253 = vst [vmem:[#allocation22_spill] sm:$0xff] %v2210_v35  ;;  %v2216_v40 = vmul.f32 %v2163_v44, %v351_v7  ;;  %v2219_v29 = vmul.f32 %v2166_v42, %v347_v54  ;;  %v1036_v49 = vpop.permute.xlu0 %1035  ;;  %343 = vrot.lane.b32.xlu1 %v2049_v20, %s1574_s12  ;;  %v2249_v52 = vrot.slane %v1512_v59, %v2018_v11 }
 0x235   :  { %v1043_v57 = vsel %vm345_vm4, %v1918_v60, %v1036_v49  ;;  %v1047_v7 = vsel %vm345_vm4, %v1036_v49, %v1918_v60  ;;  %v2246_v49 = vrot.slane %v1512_v59, %v1697_v55 }
 0x236   :  { %3254 = vst [vmem:[#allocation23_spill] sm:$0xff] %v2216_v40  ;;  %v1038_v37 = vpop.permute.xlu1 %1037  ;;  %1039 = vrot.lane.b32.xlu0 %v2047_v5, %s1574_s12  ;;  %3256 = vst [vmem:[#allocation25_spill] sm:$0xff] %v2249_v52  ;;  %v2252_v35 = vmul.f32 %v2204_v12, %v1047_v7  ;;  %v2255_v40 = vmul.f32 %v2207_v58, %v1043_v57 }
 0x237   :  { %v1044_v54 = vsel %vm345_vm4, %v1922_v61, %v1038_v37  ;;  %v1048_v60 = vsel %vm345_vm4, %v1038_v37, %v1922_v61  ;;  %3255 = vst [vmem:[#allocation24_spill] sm:$0xff] %v2246_v49  ;;  %v1528_v61 = vld [vmem:[%s3122_s7 + $0x3] ss:$8 sm:$0x3] }
 0x238   :  { %3257 = vst [vmem:[#allocation26_spill] sm:$0xff] %v2252_v35  ;;  %v2258_v46 = vmul.f32 %v2204_v12, %v1048_v60  ;;  %v2261_v42 = vmul.f32 %v2207_v58, %v1044_v54  ;;  %v392_v44 = vpop.permute.xlu0 %391  ;;  %1041 = vrot.lane.b32.xlu1 %v2074_v18, %s1574_s12 }
 0x239   :  { %v400_v59 = vsel %vm399_vm5, %v1926_v62, %v392_v44  ;;  %v404_v57 = vsel %vm399_vm5, %v392_v44, %v1926_v62  ;;  %v2287_v62 = vrot.slane %v1528_v61, %v1697_v55  ;;  %v2290_v44 = vrot.slane %v1528_v61, %v2018_v11 }
 0x23a   :  { %3258 = vst [vmem:[#allocation27_spill] sm:$0xff] %v2258_v46  ;;  %v394_v37 = vpop.permute.xlu1 %393  ;;  %395 = vrot.lane.b32.xlu0 %v2027_v0, %s1575_s1  ;;  %v2293_v7 = vmul.f32 %v2246_v49, %v404_v57  ;;  %v2296_v35 = vmul.f32 %v2249_v52, %v400_v59 }
 0x23b   :  { %v401_v60 = vsel %vm399_vm5, %v1930_v63, %v394_v37  ;;  %v405_v58 = vsel %vm399_vm5, %v394_v37, %v1930_v63  ;;  %3259 = vst [vmem:[#allocation28_spill] sm:$0xff] %v2290_v44  ;;  %v1514_v63 = vld [vmem:[%s3122_s7 + $0x5] ss:$8 sm:$0x3] }
 0x23c   :  { %3260 = vst [vmem:[#allocation29_spill] sm:$0xff] %v2293_v7  ;;  %v2299_v54 = vmul.f32 %v2246_v49, %v405_v58  ;;  %v2302_v46 = vmul.f32 %v2249_v52, %v401_v60  ;;  %v1088_v12 = vpop.permute.xlu0 %1087  ;;  %397 = vrot.lane.b32.xlu1 %v2049_v20, %s1575_s1  ;;  %v2332_v59 = vrot.slane %v1514_v63, %v2018_v11 }
 0x23d   :  { %v1095_v61 = vsel %vm399_vm5, %v1934_v1, %v1088_v12  ;;  %v1099_v58 = vsel %vm399_vm5, %v1088_v12, %v1934_v1  ;;  %v2329_v12 = vrot.slane %v1514_v63, %v1697_v55 }
 0x23e   :  { %3261 = vst [vmem:[#allocation30_spill] sm:$0xff] %v2299_v54  ;;  %v1090_v57 = vpop.permute.xlu1 %1089  ;;  %1091 = vrot.lane.b32.xlu0 %v2047_v5, %s1575_s1  ;;  %3263 = vst [vmem:[#allocation32_spill] sm:$0xff] %v2332_v59  ;;  %v2335_v7 = vmul.f32 %v2287_v62, %v1099_v58  ;;  %v2338_v54 = vmul.f32 %v2290_v44, %v1095_v61 }
 0x23f   :  { %v1096_v60 = vsel %vm399_vm5, %v1938_v2, %v1090_v57  ;;  %v1100_v1 = vsel %vm399_vm5, %v1090_v57, %v1938_v2  ;;  %3262 = vst [vmem:[#allocation31_spill] sm:$0xff] %v2329_v12  ;;  %v1530_v2 = vld [vmem:[%s3122_s7 + $0x5] ss:$8 sm:$0x3] }
 0x240   :  { %3264 = vst [vmem:[#allocation33_spill] sm:$0xff] %v2335_v7  ;;  %v2341_v37 = vmul.f32 %v2287_v62, %v1100_v1  ;;  %v2344_v52 = vmul.f32 %v2290_v44, %v1096_v60  ;;  %v475_v49 = vpop.permute.xlu0 %474  ;;  %1093 = vrot.lane.b32.xlu1 %v2074_v18, %s1575_s1 }
 0x241   :  { %v483_v63 = vsel %vm482_vm6, %v1942_v3, %v475_v49  ;;  %v487_v61 = vsel %vm482_vm6, %v475_v49, %v1942_v3  ;;  %v2370_v3 = vrot.slane %v1530_v2, %v1697_v55  ;;  %v2373_v49 = vrot.slane %v1530_v2, %v2018_v11 }
 0x242   :  { %3265 = vst [vmem:[#allocation34_spill] sm:$0xff] %v2341_v37  ;;  %v477_v57 = vpop.permute.xlu1 %476  ;;  %1323 = vrot.lane.b32.xlu0 %v1798_v31, %s1579_s15  ;;  %v2376_v58 = vmul.f32 %v2329_v12, %v483_v63  ;;  %v2379_v31 = vmul.f32 %v2332_v59, %v487_v61 }
 0x243   :  { %v484_v1 = vsel %vm482_vm6, %v1946_v4, %v477_v57  ;;  %v488_v44 = vsel %vm482_vm6, %v477_v57, %v1946_v4  ;;  %3266 = vst [vmem:[#allocation35_spill] sm:$0xff] %v2370_v3  ;;  %3267 = vst [vmem:[#allocation36_spill] sm:$0xff] %v2373_v49  ;;  %v1515_v4 = vld [vmem:[%s3122_s7 + $0x6] ss:$8 sm:$0x3] }
 0x244   :  { %3268 = vst [vmem:[#allocation37_spill] sm:$0xff] %v2376_v58  ;;  %3269 = vst [vmem:[#allocation38_spill] sm:$0xff] %v2379_v31  ;;  %v2382_v60 = vmul.f32 %v2329_v12, %v484_v1  ;;  %v2385_v7 = vmul.f32 %v2332_v59, %v488_v44  ;;  %v1168_v37 = vpop.permute.xlu0 %1167  ;;  %1325 = vrot.lane.b32.xlu1 %v1802_v32, %s1579_s15  ;;  %v2415_v44 = vrot.slane %v1515_v4, %v2018_v11 }
 0x245   :  { %v1175_v2 = vsel %vm482_vm6, %v1950_v8, %v1168_v37  ;;  %v1179_v63 = vsel %vm482_vm6, %v1168_v37, %v1950_v8  ;;  %v2412_v37 = vrot.slane %v1515_v4, %v1697_v55 }
 0x246   :  { %3270 = vst [vmem:[#allocation39_spill] sm:$0xff] %v2382_v60  ;;  %3271 = vst [vmem:[#allocation40_spill] sm:$0xff] %v2385_v7  ;;  %v1170_v61 = vpop.permute.xlu1 %1169  ;;  %478 = vrot.lane.b32.xlu0 %v2027_v0, %s1576_s13  ;;  %v2418_v58 = vmul.f32 %v2370_v3, %v1175_v2  ;;  %v2421_v60 = vmul.f32 %v2373_v49, %v1179_v63 }
 0x247   :  { %v1176_v1 = vsel %vm482_vm6, %v1954_v9, %v1170_v61  ;;  %v1180_v8 = vsel %vm482_vm6, %v1170_v61, %v1954_v9  ;;  %3272 = vst [vmem:[#allocation41_spill] sm:$0xff] %v2412_v37  ;;  %3273 = vst [vmem:[#allocation42_spill] sm:$0xff] %v2415_v44  ;;  %v1531_v9 = vld [vmem:[%s3122_s7 + $0x6] ss:$8 sm:$0x3] }
 0x248   :  { %3274 = vst [vmem:[#allocation43_spill] sm:$0xff] %v2418_v58  ;;  %3275 = vst [vmem:[#allocation44_spill] sm:$0xff] %v2421_v60  ;;  %v2424_v57 = vmul.f32 %v2370_v3, %v1176_v1  ;;  %v2427_v59 = vmul.f32 %v2373_v49, %v1180_v8  ;;  %v529_v12 = vpop.permute.xlu0 %528  ;;  %634 = vrot.lane.b32.xlu1 %v1891_v50, %s1579_s15 }
 0x249   :  { %v537_v4 = vsel %vm536_vm7, %v1958_v21, %v529_v12  ;;  %v541_v2 = vsel %vm536_vm7, %v529_v12, %v1958_v21  ;;  %v2453_v21 = vrot.slane %v1531_v9, %v1697_v55  ;;  %v2456_v12 = vrot.slane %v1531_v9, %v2018_v11 }
 0x24a   :  { %3276 = vst [vmem:[#allocation45_spill] sm:$0xff] %v2424_v57  ;;  %3277 = vst [vmem:[#allocation46_spill] sm:$0xff] %v2427_v59  ;;  %v531_v61 = vpop.permute.xlu1 %530  ;;  %1171 = vrot.lane.b32.xlu0 %v2047_v5, %s1576_s13  ;;  %v2459_v63 = vmul.f32 %v2412_v37, %v537_v4  ;;  %v2462_v58 = vmul.f32 %v2415_v44, %v541_v2 }
 0x24b   :  { %v538_v8 = vsel %vm536_vm7, %v1962_v22, %v531_v61  ;;  %v542_v49 = vsel %vm536_vm7, %v531_v61, %v1962_v22  ;;  %3278 = vst [vmem:[#allocation47_spill] sm:$0xff] %v2453_v21  ;;  %3279 = vst [vmem:[#allocation48_spill] sm:$0xff] %v2456_v12  ;;  %v1516_v22 = vld [vmem:[%s3122_s7 + $0x7] ss:$8 sm:$0x3] }
 0x24c   :  { %3280 = vst [vmem:[#allocation49_spill] sm:$0xff] %v2459_v63  ;;  %3281 = vst [vmem:[#allocation50_spill] sm:$0xff] %v2462_v58  ;;  %v2465_v1 = vmul.f32 %v2412_v37, %v538_v8  ;;  %v2468_v57 = vmul.f32 %v2415_v44, %v542_v49  ;;  %v1220_v3 = vpop.permute.xlu0 %1219  ;;  %480 = vrot.lane.b32.xlu1 %v2049_v20, %s1576_s13  ;;  %v2498_v49 = vrot.slane %v1516_v22, %v2018_v11 }
 0x24d   :  { %v1227_v9 = vsel %vm536_vm7, %v1966_v23, %v1220_v3  ;;  %v1231_v4 = vsel %vm536_vm7, %v1220_v3, %v1966_v23  ;;  %v2495_v3 = vrot.slane %v1516_v22, %v1697_v55 }
 0x24e   :  { %3282 = vst [vmem:[#allocation51_spill] sm:$0xff] %v2465_v1  ;;  %3283 = vst [vmem:[#allocation52_spill] sm:$0xff] %v2468_v57  ;;  %v1222_v2 = vpop.permute.xlu1 %1221  ;;  %532 = vrot.lane.b32.xlu0 %v2027_v0, %s1577_s14  ;;  %v2501_v63 = vmul.f32 %v2453_v21, %v1227_v9  ;;  %v2504_v1 = vmul.f32 %v2456_v12, %v1231_v4  ;;  %v1517_v4 = vld [vmem:[%s3122_s7 + $0x10] ss:$8 sm:$0x3] }
 0x24f   :  { %v1228_v8 = vsel %vm536_vm7, %v1970_v24, %v1222_v2  ;;  %v1232_v23 = vsel %vm536_vm7, %v1222_v2, %v1970_v24  ;;  %3284 = vst [vmem:[#allocation53_spill] sm:$0xff] %v2495_v3  ;;  %3285 = vst [vmem:[#allocation54_spill] sm:$0xff] %v2498_v49  ;;  %v1532_v24 = vld [vmem:[%s3122_s7 + $0x7] ss:$8 sm:$0x3] }
 0x250   :  { %3286 = vst [vmem:[#allocation55_spill] sm:$0xff] %v2501_v63  ;;  %3287 = vst [vmem:[#allocation56_spill] sm:$0xff] %v2504_v1  ;;  %v2507_v61 = vmul.f32 %v2453_v21, %v1228_v8  ;;  %v2510_v44 = vmul.f32 %v2456_v12, %v1232_v23  ;;  %v583_v37 = vpop.permute.xlu0 %582  ;;  %1173 = vrot.lane.b32.xlu1 %v2074_v18, %s1576_s13 }
 0x251   :  { %v591_v22 = vsel %vm590_vm8, %v1974_v25, %v583_v37  ;;  %v595_v9 = vsel %vm590_vm8, %v583_v37, %v1974_v25  ;;  %v2536_v25 = vrot.slane %v1532_v24, %v1697_v55  ;;  %v2539_v37 = vrot.slane %v1532_v24, %v2018_v11 }
 0x252   :  { %3288 = vst [vmem:[#allocation57_spill] sm:$0xff] %v2507_v61  ;;  %3289 = vst [vmem:[#allocation58_spill] sm:$0xff] %v2510_v44  ;;  %v585_v2 = vpop.permute.xlu1 %584  ;;  %1223 = vrot.lane.b32.xlu0 %v2047_v5, %s1577_s14  ;;  %v2545_v8 = vmul.f32 %v2495_v3, %v591_v22  ;;  %v2548_v63 = vmul.f32 %v2498_v49, %v595_v9  ;;  %v2584_v9 = vrot.slane %v1517_v4, %v2018_v11 }
 0x253   :  { %v592_v23 = vsel %vm590_vm8, %v1978_v26, %v585_v2  ;;  %v596_v12 = vsel %vm590_vm8, %v585_v2, %v1978_v26  ;;  %3290 = vst [vmem:[#allocation59_spill] sm:$0xff] %v2536_v25  ;;  %3291 = vst [vmem:[#allocation60_spill] sm:$0xff] %v2539_v37 }
 0x254   :  { %3292 = vst [vmem:[#allocation61_spill] sm:$0xff] %v2545_v8  ;;  %3293 = vst [vmem:[#allocation62_spill] sm:$0xff] %v2548_v63  ;;  %v2551_v61 = vmul.f32 %v2495_v3, %v592_v23  ;;  %v2554_v26 = vmul.f32 %v2498_v49, %v596_v12  ;;  %v1272_v2 = vpop.permute.xlu0 %1271  ;;  %534 = vrot.lane.b32.xlu1 %v2049_v20, %s1577_s14  ;;  %v2570_v12 = vrot.slane %v1517_v4, %v1697_v55  ;;  %v2589_v55 = vld [vmem:[%s3123_s6] sm:$0xff] }
 0x255   :  { %v1279_v24 = vsel %vm590_vm8, %v1982_v28, %v1272_v2  ;;  %v1283_v22 = vsel %vm590_vm8, %v1272_v2, %v1982_v28  ;;  %3298 = vst [vmem:[#allocation67_spill] sm:$0xff] %v2584_v9  ;;  %3299 = vst [vmem:[#allocation68_spill] sm:$0xff] %v2589_v55 }
 0x256   :  { %3294 = vst [vmem:[#allocation63_spill] sm:$0xff] %v2551_v61  ;;  %3295 = vst [vmem:[#allocation64_spill] sm:$0xff] %v2554_v26  ;;  %v1274_v23 = vpop.permute.xlu1 %1273  ;;  %586 = vrot.lane.b32.xlu0 %v2027_v0, %s1578_s2  ;;  %v2575_v3 = vmul.f32 %v2536_v25, %v1279_v24  ;;  %v2592_v49 = vmul.f32 %v2539_v37, %v1283_v22 }
 0x257   :  { %3296 = vst [vmem:[#allocation65_spill] sm:$0xff] %v2570_v12  ;;  %v1280_v28 = vsel %vm590_vm8, %v1986_v30, %v1274_v23  ;;  %v1284_v2 = vsel %vm590_vm8, %v1274_v23, %v1986_v30  ;;  %v1519_v30 = vcombine.high %v2589_v55, %v2589_v55 }
 0x258   :  { %3297 = vst [vmem:[#allocation66_spill] sm:$0xff] %v2575_v3  ;;  %3300 = vst [vmem:[#allocation69_spill] sm:$0xff] %v2592_v49  ;;  %v2595_v24 = vmul.f32 %v2536_v25, %v1280_v28  ;;  %v2598_v8 = vmul.f32 %v2539_v37, %v1284_v2  ;;  %v637_v61 = vpop.permute.xlu0 %636  ;;  %1225 = vrot.lane.b32.xlu1 %v2074_v18, %s1577_s14 }
 0x259   :  { %v645_v4 = vsel %vm644_vm9, %v1992_v39, %v637_v61  ;;  %v649_v22 = vsel %vm644_vm9, %v637_v61, %v1992_v39  ;;  %764 = vmatprep.mubr.bf16.mxu1 %v1519_v30  ;;  %1435 = vmatprep.mubr.bf16.mxu0 %v1519_v30 }
 0x25a   :  { %3301 = vst [vmem:[#allocation70_spill] sm:$0xff] %v2595_v24  ;;  %3302 = vst [vmem:[#allocation71_spill] sm:$0xff] %v2598_v8  ;;  %v639_v28 = vpop.permute.xlu1 %638  ;;  %1275 = vrot.lane.b32.xlu0 %v2047_v5, %s1578_s2  ;;  %v2623_v39 = vmul.f32 %v2570_v12, %v645_v4  ;;  %v2626_v61 = vmul.f32 %v2584_v9, %v649_v22 }
 0x25b   :  { %v646_v37 = vsel %vm644_vm9, %v2003_v45, %v639_v28  ;;  %v650_v25 = vsel %vm644_vm9, %v639_v28, %v2003_v45 }
 0x25c   :  { %3303 = vst [vmem:[#allocation72_spill] sm:$0xff] %v2623_v39  ;;  %3304 = vst [vmem:[#allocation73_spill] sm:$0xff] %v2626_v61  ;;  %v2629_v23 = vmul.f32 %v2570_v12, %v646_v37  ;;  %v2632_v2 = vmul.f32 %v2584_v9, %v650_v25  ;;  %v225_v3 = vpop.permute.xlu0 %224  ;;  %588 = vrot.lane.b32.xlu1 %v2049_v20, %s1578_s2 }
 0x25e   :  { %3305 = vst [vmem:[#allocation74_spill] sm:$0xff] %v2629_v23  ;;  %3306 = vst [vmem:[#allocation75_spill] sm:$0xff] %v2632_v2  ;;  %632 = vrot.lane.b32.xlu0 %v1884_v47, %s1579_s15  ;;  %v227_v30 = vpop.permute.xlu1 %226 }
 0x260   :  { %v928_v22 = vpop.permute.xlu0 %927  ;;  %1277 = vrot.lane.b32.xlu1 %v2074_v18, %s1578_s2 }
 0x262   :  { %640 = vrot.lane.b32.xlu0 %v2027_v0, %s1579_s15  ;;  %v930_v25 = vpop.permute.xlu1 %929 }
 0x264   :  { %v280_v37 = vpop.permute.xlu0 %279  ;;  %1321 = vrot.lane.b32.xlu1 %v1904_v56, %s1579_s15 }
 0x266   :  { %1319 = vrot.lane.b32.xlu0 %v1898_v53, %s1579_s15  ;;  %v282_v28 = vpop.permute.xlu1 %281 }
 0x268   :  { %v2650_v45 = vpop.permute.xlu0 %979  ;;  %642 = vrot.lane.b32.xlu1 %v2049_v20, %s1579_s15 }
 0x26a   :  { %1327 = vrot.lane.b32.xlu0 %v2047_v5, %s1579_s15  ;;  %v2656_v4 = vpop.permute.xlu1 %981 }
 0x26c   :  { %v2658_v9 = vpop.permute.xlu0 %333  ;;  %1329 = vrot.lane.b32.xlu1 %v2074_v18, %s1579_s15 }
 0x26e   :  { %v2662_v12 = vpop.permute.xlu1 %335 }
 0x270   :  { %v2664_v39 = vpop.permute.xlu0 %1031 }
 0x272   :  { %v2666_v23 = vpop.permute.xlu1 %1033 }
 0x274   :  { %v2668_v61 = vpop.permute.xlu0 %387 }
 0x276   :  { %v2670_v2 = vpop.permute.xlu1 %389 }
 0x278   :  { %v2672_v24 = vpop.permute.xlu0 %1083 }
 0x27a   :  { %v2674_v55 = vpop.permute.xlu1 %1085 }
 0x27c   :  { %v2676_v49 = vpop.permute.xlu0 %470 }
 0x27e   :  { %v2678_v8 = vpop.permute.xlu1 %472 }
 0x27f   :  { %3307 = vst [vmem:[#allocation76_spill] sm:$0xff] %v2678_v8 }
 0x280   :  { %v2680_v63 = vpop.permute.xlu0 %1163 }
 0x281   :  { %3308 = vst [vmem:[#allocation77_spill] sm:$0xff] %v2680_v63 }
 0x282   :  { %v2682_v26 = vpop.permute.xlu1 %1165 }
 0x283   :  { %3309 = vst [vmem:[#allocation78_spill] sm:$0xff] %v2682_v26 }
 0x284   :  { %v2684_v21 = vpop.permute.xlu0 %524 }
 0x285   :  { %3310 = vst [vmem:[#allocation79_spill] sm:$0xff] %v2684_v21 }
 0x286   :  { %v2686_v1 = vpop.permute.xlu1 %526 }
 0x287   :  { %3311 = vst [vmem:[#allocation80_spill] sm:$0xff] %v2686_v1 }
 0x288   :  { %v2688_v44 = vpop.permute.xlu0 %1215 }
 0x289   :  { %3312 = vst [vmem:[#allocation81_spill] sm:$0xff] %v2688_v44 }
 0x28a   :  { %v2690_v58 = vpop.permute.xlu1 %1217 }
 0x28b   :  { %3313 = vst [vmem:[#allocation82_spill] sm:$0xff] %v2690_v58 }
 0x28c   :  { %v2692_v57 = vpop.permute.xlu0 %578 }
 0x28d   :  { %3314 = vst [vmem:[#allocation83_spill] sm:$0xff] %v2692_v57 }
 0x28e   :  { %v2694_v60 = vpop.permute.xlu1 %580 }
 0x28f   :  { %3315 = vst [vmem:[#allocation84_spill] sm:$0xff] %v2694_v60 }
 0x290   :  { %v2696_v59 = vpop.permute.xlu0 %1267 }
 0x291   :  { %3316 = vst [vmem:[#allocation85_spill] sm:$0xff] %v2696_v59 }
 0x292   :  { %v2698_v31 = vpop.permute.xlu1 %1269 }
 0x293   :  { %3317 = vst [vmem:[#allocation86_spill] sm:$0xff] %v2698_v31 }
 0x294   :  { %v233_v8 = vpop.permute.xlu0 %232 }
 0x295   :  { %v241_v26 = vsel %vm238_vm2, %v225_v3, %v233_v8  ;;  %v245_v21 = vsel %vm238_vm2, %v233_v8, %v225_v3 }
 0x296   :  { %v235_v1 = vpop.permute.xlu1 %234  ;;  %v263_v60 = vmul.f32 %v2030_v10, %v245_v21  ;;  %v264_v59 = vmul.f32 %v2033_v34, %v241_v26 }
 0x297   :  { %v242_v44 = vsel %vm238_vm2, %v227_v30, %v235_v1  ;;  %v246_v58 = vsel %vm238_vm2, %v235_v1, %v227_v30 }
 0x298   :  { %v265_v31 = vmul.f32 %v2030_v10, %v246_v58  ;;  %v266_v57 = vmul.f32 %v2033_v34, %v242_v44  ;;  %v936_v7 = vpop.permute.xlu0 %935 }
 0x299   :  { %v941_v53 = vsel %vm238_vm2, %v928_v22, %v936_v7  ;;  %v945_v3 = vsel %vm238_vm2, %v936_v7, %v928_v22 }
 0x29a   :  { %v269_v8 = vpack.c.bf16 %v265_v31, %v263_v60  ;;  %v938_v63 = vpop.permute.xlu1 %937  ;;  %v270_v56 = vpack.c.bf16 %v266_v57, %v264_v59  ;;  %v963_v10 = vmul.f32 %v2060_v48, %v945_v3  ;;  %v964_v34 = vmul.f32 %v2063_v38, %v941_v53 }
 0x29b   :  { %v942_v1 = vsel %vm238_vm2, %v930_v25, %v938_v63  ;;  %v946_v21 = vsel %vm238_vm2, %v938_v63, %v930_v25  ;;  %v3318_v60 = vpack.c.bf16 %v2136_v51, %v2130_v13 }
 0x29c   :  { %v965_v58 = vmul.f32 %v2060_v48, %v946_v21  ;;  %v966_v44 = vmul.f32 %v2063_v38, %v942_v1  ;;  %v288_v26 = vpop.permute.xlu0 %287  ;;  %734 = vmatprep.subr.bf16.mxu1 %v270_v56 }
 0x29d   :  { %v294_v31 = vsel %vm291_vm3, %v280_v37, %v288_v26  ;;  %v298_v7 = vsel %vm291_vm3, %v288_v26, %v280_v37  ;;  %735 = vmatpush1.bf16.msra.mxu1 %v269_v8  ;;  %v3319_v37 = vpack.c.bf16 %v2133_v19, %v2118_v17 }
 0x29e   :  { %v969_v59 = vpack.c.bf16 %v965_v58, %v963_v10  ;;  %736 = vmatprep.subr.bf16.mxu1 %v3318_v60  ;;  %v290_v57 = vpop.permute.xlu1 %289  ;;  %v970_v53 = vpack.c.bf16 %v966_v44, %v964_v34  ;;  %v317_v38 = vmul.f32 %v2086_v36, %v298_v7  ;;  %v318_v63 = vmul.f32 %v2096_v43, %v294_v31  ;;  %v3324_v31 = vld [vmem:[#allocation17_spill] sm:$0xff] }
 0x29f   :  { %v295_v48 = vsel %vm291_vm3, %v282_v28, %v290_v57  ;;  %v299_v56 = vsel %vm291_vm3, %v290_v57, %v282_v28 }
 0x2a0   :  { %v319_v30 = vmul.f32 %v2086_v36, %v299_v56  ;;  %v320_v22 = vmul.f32 %v2096_v43, %v295_v48  ;;  %v988_v25 = vpop.permute.xlu0 %987  ;;  %1405 = vmatprep.subr.bf16.mxu0 %v970_v53  ;;  %v3320_v36 = vpack.c.bf16 %v2178_v33, %v2172_v15  ;;  %v3326_v48 = vld [vmem:[#allocation23_spill] sm:$0xff] }
 0x2a1   :  { %v993_v13 = vsel %vm291_vm3, %v2650_v45, %v988_v25  ;;  %v997_v51 = vsel %vm291_vm3, %v988_v25, %v2650_v45  ;;  %737 = vmatpush1.bf16.msra.mxu1 %v3319_v37  ;;  %1406 = vmatpush1.bf16.msra.mxu0 %v969_v59  ;;  %v3325_v59 = vld [vmem:[#allocation18_spill] sm:$0xff]  ;;  %v3331_v37 = vld [vmem:[#allocation21_spill] sm:$0xff] }
 0x2a2   :  { %v323_v28 = vpack.c.bf16 %v319_v30, %v317_v38  ;;  %1407 = vmatprep.subr.bf16.mxu0 %v3320_v36  ;;  %v990_v43 = vpop.permute.xlu1 %989  ;;  %v324_v3 = vpack.c.bf16 %v320_v22, %v318_v63  ;;  %v1015_v1 = vmul.f32 %v2115_v14, %v997_v51  ;;  %v1016_v17 = vmul.f32 %v2127_v6, %v993_v13  ;;  %v3330_v13 = vld [vmem:[#allocation20_spill] sm:$0xff] }
 0x2a3   :  { %v994_v8 = vsel %vm291_vm3, %v2656_v4, %v990_v43  ;;  %v998_v45 = vsel %vm291_vm3, %v990_v43, %v2656_v4  ;;  %v3321_v4 = vld [vmem:[#allocation19_spill] sm:$0xff]  ;;  %v3329_v63 = vpack.c.bf16 %v2261_v42, %v2255_v40 }
 0x2a4   :  { %v1017_v19 = vmul.f32 %v2115_v14, %v998_v45  ;;  %v1018_v21 = vmul.f32 %v2127_v6, %v994_v8  ;;  %v342_v33 = vpop.permute.xlu0 %341  ;;  %738 = vmatprep.subr.bf16.mxu1 %v324_v3  ;;  %v3322_v34 = vpack.c.bf16 %v2175_v16, %v3321_v4  ;;  %v3323_v14 = vpack.c.bf16 %v2219_v29, %v2213_v27  ;;  %v3333_v8 = vld [vmem:[#allocation26_spill] sm:$0xff]  ;;  %v3336_v4 = vld [vmem:[#allocation11_spill] sm:$0xff] }
 0x2a5   :  { %v348_v15 = vsel %vm345_vm4, %v2658_v9, %v342_v33  ;;  %v352_v10 = vsel %vm345_vm4, %v342_v33, %v2658_v9  ;;  %739 = vmatpush1.bf16.msra.mxu1 %v323_v28 }
 0x2a6   :  { %1408 = vmatpush1.bf16.msra.mxu0 %v3322_v34  ;;  %v1021_v58 = vpack.c.bf16 %v1017_v19, %v1015_v1  ;;  %740 = vmatprep.subr.bf16.mxu1 %v3323_v14  ;;  %v344_v6 = vpop.permute.xlu1 %343  ;;  %v1022_v44 = vpack.c.bf16 %v1018_v21, %v1016_v17  ;;  %v371_v7 = vmul.f32 %v3324_v31, %v352_v10  ;;  %v1566_v1 = vld [vmem:[%s3122_s7 + $0x4] ss:$8 sm:$0x3] }
 0x2a7   :  { %v349_v26 = vsel %vm345_vm4, %v2662_v12, %v344_v6  ;;  %v353_v9 = vsel %vm345_vm4, %v344_v6, %v2662_v12  ;;  %v372_v16 = vmul.f32 %v3325_v59, %v348_v15  ;;  %v3327_v12 = vld [vmem:[#allocation22_spill] sm:$0xff]  ;;  %v447_v17 = vrot.slane %v1566_v1, %v2018_v11  ;;  %v3338_v6 = vld [vmem:[#allocation25_spill] sm:$0xff] }
 0x2a8   :  { %v373_v60 = vmul.f32 %v3324_v31, %v353_v9  ;;  %v374_v57 = vmul.f32 %v3325_v59, %v349_v26  ;;  %v1040_v27 = vpop.permute.xlu0 %1039  ;;  %1409 = vmatprep.subr.bf16.mxu0 %v1022_v44  ;;  %v3328_v56 = vpack.c.bf16 %v3326_v48, %v3327_v12  ;;  %v3335_v21 = vpack.c.bf16 %v2302_v46, %v2296_v35  ;;  %v3337_v35 = vld [vmem:[#allocation24_spill] sm:$0xff]  ;;  %v3339_v59 = vld [vmem:[#allocation30_spill] sm:$0xff] }
 0x2a9   :  { %v1045_v29 = vsel %vm345_vm4, %v2664_v39, %v1040_v27  ;;  %v1049_v53 = vsel %vm345_vm4, %v1040_v27, %v2664_v39  ;;  %v453_v34 = vmul.f32 %v447_v17, %v3336_v4 }
 0x2aa   :  { %741 = vmatpush1.bf16.msra.mxu1 %v3328_v56  ;;  %1410 = vmatpush1.bf16.msra.mxu0 %v1021_v58  ;;  %v377_v38 = vpack.c.bf16 %v373_v60, %v371_v7  ;;  %v1042_v30 = vpop.permute.xlu1 %1041  ;;  %v378_v22 = vpack.c.bf16 %v374_v57, %v372_v16  ;;  %v1067_v51 = vmul.f32 %v3330_v13, %v1049_v53  ;;  %v1567_v58 = vld [vmem:[%s3122_s7 + $0x4] ss:$8 sm:$0x3]  ;;  %v3340_v16 = vld [vmem:[#allocation29_spill] sm:$0xff]  ;;  %v3342_v57 = vld [vmem:[#allocation10_spill] sm:$0xff] }
 0x2ab   :  { %1411 = vmatprep.subr.bf16.mxu0 %v3329_v63  ;;  %v1046_v25 = vsel %vm345_vm4, %v2666_v23, %v1042_v30  ;;  %v1050_v39 = vsel %vm345_vm4, %v1042_v30, %v2666_v23  ;;  %v1068_v28 = vmul.f32 %v3331_v37, %v1045_v29  ;;  %v3332_v23 = vld [vmem:[#allocation27_spill] sm:$0xff]  ;;  %v1140_v14 = vrot.slane %v1567_v58, %v2018_v11  ;;  %v3355_v58 = vld [vmem:[#allocation77_spill] sm:$0xff] }
 0x2ac   :  { %v1069_v36 = vmul.f32 %v3330_v13, %v1050_v39  ;;  %v1070_v43 = vmul.f32 %v3331_v37, %v1046_v25  ;;  %v396_v42 = vpop.permute.xlu0 %395  ;;  %742 = vmatprep.subr.bf16.mxu1 %v378_v22  ;;  %v3334_v45 = vpack.c.bf16 %v3332_v23, %v3333_v8  ;;  %v3341_v60 = vpack.c.bf16 %v3339_v59, %v3340_v16  ;;  %v3344_v25 = vld [vmem:[#allocation28_spill] sm:$0xff]  ;;  %v3345_v13 = vld [vmem:[#allocation34_spill] sm:$0xff] }
 0x2ad   :  { %v402_v40 = vsel %vm399_vm5, %v2668_v61, %v396_v42  ;;  %v406_v3 = vsel %vm399_vm5, %v396_v42, %v2668_v61  ;;  %v451_v27 = vmul.f32 %v447_v17, %v3342_v57  ;;  %v3343_v53 = vpack.c.bf16 %v2344_v52, %v2338_v54  ;;  %v3364_v57 = vld [vmem:[#allocation31_spill] sm:$0xff] }
 0x2ae   :  { %743 = vmatpush1.bf16.msra.mxu1 %v377_v38  ;;  %1412 = vmatpush1.bf16.msra.mxu0 %v3334_v45  ;;  %v1073_v19 = vpack.c.bf16 %v1069_v36, %v1067_v51  ;;  %v398_v33 = vpop.permute.xlu1 %397  ;;  %v1074_v15 = vpack.c.bf16 %v1070_v43, %v1068_v28  ;;  %v425_v46 = vmul.f32 %v3337_v35, %v406_v3  ;;  %v3346_v51 = vld [vmem:[#allocation33_spill] sm:$0xff]  ;;  %v3348_v36 = vld [vmem:[#allocation12_spill] sm:$0xff] }
 0x2af   :  { %744 = vmatprep.subr.bf16.mxu1 %v3335_v21  ;;  %v403_v61 = vsel %vm399_vm5, %v2670_v2, %v398_v33  ;;  %v407_v10 = vsel %vm399_vm5, %v398_v33, %v2670_v2  ;;  %v426_v44 = vmul.f32 %v3338_v6, %v402_v40  ;;  %v1146_v56 = vmul.f32 %v1140_v14, %v1802_v32  ;;  %v3350_v21 = vld [vmem:[#allocation5_spill] sm:$0xff]  ;;  %v3351_v33 = vld [vmem:[#allocation7_spill] sm:$0xff] }
 0x2b0   :  { %v427_v26 = vmul.f32 %v3337_v35, %v407_v10  ;;  %v428_v9 = vmul.f32 %v3338_v6, %v403_v61  ;;  %v1092_v31 = vpop.permute.xlu0 %1091  ;;  %1413 = vmatprep.subr.bf16.mxu0 %v1074_v15  ;;  %v459_v63 = vpack.c.bf16 %v453_v34, %v451_v27  ;;  %v457_v30 = vmul.f32 %v447_v17, %v2049_v20  ;;  %v3353_v61 = vld [vmem:[#allocation14_spill] sm:$0xff]  ;;  %v3357_v6 = vld [vmem:[#allocation9_spill] sm:$0xff] }
 0x2b1   :  { %v1097_v2 = vsel %vm399_vm5, %v2672_v24, %v1092_v31  ;;  %v1101_v7 = vsel %vm399_vm5, %v1092_v31, %v2672_v24  ;;  %v3347_v37 = vpack.c.bf16 %v3345_v13, %v3346_v51  ;;  %v1144_v43 = vmul.f32 %v1140_v14, %v3348_v36  ;;  %v3354_v10 = vld [vmem:[#allocation6_spill] sm:$0xff] }
 0x2b2   :  { %745 = vmatpush1.bf16.msra.mxu1 %v3341_v60  ;;  %1414 = vmatpush1.bf16.msra.mxu0 %v1073_v19  ;;  %v431_v29 = vpack.c.bf16 %v427_v26, %v425_v46  ;;  %v1094_v48 = vpop.permute.xlu1 %1093  ;;  %v432_v12 = vpack.c.bf16 %v428_v9, %v426_v44  ;;  %v1119_v22 = vmul.f32 %v2287_v62, %v1101_v7  ;;  %v3356_v46 = vld [vmem:[#allocation8_spill] sm:$0xff]  ;;  %v3361_v31 = vld [vmem:[#allocation38_spill] sm:$0xff] }
 0x2b3   :  { %1415 = vmatprep.subr.bf16.mxu0 %v3343_v53  ;;  %v1098_v24 = vsel %vm399_vm5, %v2674_v55, %v1094_v48  ;;  %v1102_v38 = vsel %vm399_vm5, %v1094_v48, %v2674_v55  ;;  %v1120_v52 = vmul.f32 %v3344_v25, %v1097_v2  ;;  %v455_v42 = vmul.f32 %v447_v17, %v2027_v0  ;;  %v3360_v9 = vld [vmem:[#allocation40_spill] sm:$0xff] }
 0x2b4   :  { %v1121_v54 = vmul.f32 %v2287_v62, %v1102_v38  ;;  %v1122_v39 = vmul.f32 %v3344_v25, %v1098_v24  ;;  %v2861_v32 = vpop.permute.xlu0 %1323  ;;  %746 = vmatprep.subr.bf16.mxu1 %v432_v12  ;;  %v3349_v62 = vld [vmem:[#allocation4_spill] sm:$0xff]  ;;  %v1152_v23 = vpack.c.bf16 %v1146_v56, %v1144_v43  ;;  %v1150_v45 = vmul.f32 %v1140_v14, %v2074_v18  ;;  %v3366_v24 = vld [vmem:[#allocation79_spill] sm:$0xff] }
 0x2b5   :  { %v456_v40 = vmul.f32 %v3349_v62, %v1891_v50  ;;  %v461_v8 = vpack.c.bf16 %v457_v30, %v455_v42  ;;  %v3352_v0 = vpack.c.bf16 %v3350_v21, %v3351_v33  ;;  %v454_v50 = vmul.f32 %v3349_v62, %v1884_v47  ;;  %v3363_v7 = vld [vmem:[#allocation76_spill] sm:$0xff]  ;;  %v3367_v30 = vld [vmem:[#allocation39_spill] sm:$0xff]  ;;  %v3377_v21 = vld [vmem:[#allocation45_spill] sm:$0xff] }
 0x2b6   :  { %747 = vmatpush1.bf16.msra.mxu1 %v431_v29  ;;  %1416 = vmatpush1.bf16.msra.mxu0 %v3347_v37  ;;  %v1125_v55 = vpack.c.bf16 %v1121_v54, %v1119_v22  ;;  %v2866_v28 = vpop.permute.xlu1 %1325  ;;  %v1126_v20 = vpack.c.bf16 %v1122_v39, %v1120_v52  ;;  %v1148_v18 = vmul.f32 %v1140_v14, %v2047_v5  ;;  %v3359_v5 = vld [vmem:[#allocation13_spill] sm:$0xff]  ;;  %v3365_v29 = vld [vmem:[#allocation32_spill] sm:$0xff]  ;;  %v3370_v54 = vld [vmem:[#allocation46_spill] sm:$0xff] }
 0x2b7   :  { %748 = vmatprep.subr.bf16.mxu1 %v459_v63  ;;  %v460_v15 = vpack.c.bf16 %v456_v40, %v454_v50  ;;  %v1149_v4 = vmul.f32 %v3354_v10, %v3353_v61  ;;  %v3358_v44 = vpack.c.bf16 %v3356_v46, %v3357_v6  ;;  %v1147_v14 = vmul.f32 %v3354_v10, %v3359_v5  ;;  %v3368_v22 = vld [vmem:[#allocation37_spill] sm:$0xff]  ;;  %v3371_v39 = vld [vmem:[#allocation44_spill] sm:$0xff]  ;;  %v3374_v43 = vld [vmem:[#allocation35_spill] sm:$0xff] }
 0x2b8   :  { %v479_v3 = vpop.permute.xlu0 %478  ;;  %1417 = vmatprep.subr.bf16.mxu0 %v1126_v20  ;;  %v3362_v2 = vpack.c.bf16 %v3360_v9, %v3361_v31  ;;  %v3369_v25 = vpack.c.bf16 %v3367_v30, %v3368_v22  ;;  %v3372_v13 = vpack.c.bf16 %v3370_v54, %v3371_v39  ;;  %v3375_v62 = vld [vmem:[#allocation36_spill] sm:$0xff]  ;;  %v3378_v33 = vld [vmem:[#allocation43_spill] sm:$0xff]  ;;  %v3381_v61 = vld [vmem:[#allocation50_spill] sm:$0xff] }
 0x2b9   :  { %v485_v1 = vsel %vm482_vm6, %v2676_v49, %v479_v3  ;;  %v489_v19 = vsel %vm482_vm6, %v479_v3, %v2676_v49  ;;  %v1154_v49 = vpack.c.bf16 %v1150_v45, %v1148_v18  ;;  %v1153_v60 = vpack.c.bf16 %v1149_v4, %v1147_v14  ;;  %v3376_v45 = vld [vmem:[#allocation81_spill] sm:$0xff]  ;;  %v3385_v46 = vld [vmem:[#allocation42_spill] sm:$0xff] }
 0x2ba   :  { %749 = vmatpush1.bf16.msra.mxu1 %v3352_v0  ;;  %1418 = vmatpush1.bf16.msra.mxu0 %v1125_v55  ;;  %v2884_v17 = vpop.permute.xlu1 %634  ;;  %v508_v27 = vmul.f32 %v3364_v57, %v485_v1  ;;  %v509_v53 = vmul.f32 %v3365_v29, %v489_v19  ;;  %v3373_v55 = vld [vmem:[#allocation78_spill] sm:$0xff]  ;;  %v3379_v0 = vpack.c.bf16 %v3377_v21, %v3378_v33  ;;  %v3396_v54 = vld [vmem:[#allocation85_spill] sm:$0xff] }
 0x2bb   :  { %1419 = vmatprep.subr.bf16.mxu0 %v1152_v23  ;;  %750 = vmatprep.subr.bf16.mxu1 %v461_v8  ;;  %v3405_v21 = vld [vmem:[#allocation53_spill] sm:$0xff] }
 0x2bc   :  { %v1172_v34 = vpop.permute.xlu0 %1171 }
 0x2bd   :  { %v1177_v35 = vsel %vm482_vm6, %v3355_v58, %v1172_v34  ;;  %v1181_v47 = vsel %vm482_vm6, %v1172_v34, %v3355_v58  ;;  %v3383_v34 = vld [vmem:[#allocation80_spill] sm:$0xff] }
 0x2be   :  { %751 = vmatpush1.bf16.msra.mxu1 %v460_v15  ;;  %1420 = vmatpush1.bf16.msra.mxu0 %v3358_v44  ;;  %v481_v26 = vpop.permute.xlu1 %480  ;;  %v1199_v42 = vmul.f32 %v3374_v43, %v1177_v35  ;;  %v1200_v40 = vmul.f32 %v3375_v62, %v1181_v47  ;;  %v3380_v15 = vld [vmem:[#allocation52_spill] sm:$0xff]  ;;  %v3384_v35 = vld [vmem:[#allocation41_spill] sm:$0xff] }
 0x2bf   :  { %1421 = vmatprep.subr.bf16.mxu0 %v1154_v49  ;;  %752 = vmatprep.subr.bf16.mxu1 %v3362_v2  ;;  %v486_v59 = vsel %vm482_vm6, %v3363_v7, %v481_v26  ;;  %v490_v16 = vsel %vm482_vm6, %v481_v26, %v3363_v7  ;;  %v3382_v10 = vpack.c.bf16 %v3380_v15, %v3381_v61  ;;  %v3386_v26 = vld [vmem:[#allocation83_spill] sm:$0xff]  ;;  %v3388_v7 = vld [vmem:[#allocation49_spill] sm:$0xff] }
 0x2c0   :  { %v510_v48 = vmul.f32 %v3364_v57, %v486_v59  ;;  %v511_v12 = vmul.f32 %v3365_v29, %v490_v16  ;;  %v533_v56 = vpop.permute.xlu0 %532  ;;  %v3387_v2 = vld [vmem:[#allocation51_spill] sm:$0xff]  ;;  %v3391_v57 = vld [vmem:[#allocation56_spill] sm:$0xff] }
 0x2c1   :  { %v539_v38 = vsel %vm536_vm7, %v3366_v24, %v533_v56  ;;  %v543_v63 = vsel %vm536_vm7, %v533_v56, %v3366_v24  ;;  %v3389_v59 = vpack.c.bf16 %v3387_v2, %v3388_v7  ;;  %v3394_v24 = vld [vmem:[#allocation47_spill] sm:$0xff]  ;;  %v3415_v2 = vld [vmem:[#allocation86_spill] sm:$0xff] }
 0x2c2   :  { %753 = vmatpush1.bf16.msra.mxu1 %v3369_v25  ;;  %1422 = vmatpush1.bf16.msra.mxu0 %v1153_v60  ;;  %v514_v52 = vpack.c.bf16 %v510_v48, %v508_v27  ;;  %v1174_v51 = vpop.permute.xlu1 %1173  ;;  %v515_v37 = vpack.c.bf16 %v511_v12, %v509_v53  ;;  %v562_v47 = vmul.f32 %v3384_v35, %v539_v38  ;;  %v3390_v60 = vld [vmem:[#allocation58_spill] sm:$0xff] }
 0x2c3   :  { %1423 = vmatprep.subr.bf16.mxu0 %v3372_v13  ;;  %v1178_v20 = vsel %vm482_vm6, %v3373_v55, %v1174_v51  ;;  %v1182_v36 = vsel %vm482_vm6, %v1174_v51, %v3373_v55  ;;  %v563_v6 = vmul.f32 %v3385_v46, %v543_v63  ;;  %v3392_v27 = vpack.c.bf16 %v3390_v60, %v3391_v57  ;;  %v3393_v48 = vld [vmem:[#allocation82_spill] sm:$0xff]  ;;  %v3395_v63 = vld [vmem:[#allocation48_spill] sm:$0xff]  ;;  %v3397_v51 = vld [vmem:[#allocation57_spill] sm:$0xff] }
 0x2c4   :  { %v1201_v3 = vmul.f32 %v3374_v43, %v1178_v20  ;;  %v1202_v23 = vmul.f32 %v3375_v62, %v1182_v36  ;;  %v1224_v8 = vpop.permute.xlu0 %1223  ;;  %754 = vmatprep.subr.bf16.mxu1 %v515_v37  ;;  %v3398_v37 = vld [vmem:[#allocation55_spill] sm:$0xff]  ;;  %v1533_v20 = vld [vmem:[%s3122_s7 + $0x10] ss:$8 sm:$0x3]  ;;  %v3417_v57 = vld [vmem:[#allocation60_spill] sm:$0xff] }
 0x2c5   :  { %v1229_v1 = vsel %vm536_vm7, %v3376_v45, %v1224_v8  ;;  %v1233_v19 = vsel %vm536_vm7, %v1224_v8, %v3376_v45  ;;  %v3399_v55 = vpack.c.bf16 %v3397_v51, %v3398_v37  ;;  %v3401_v62 = vld [vmem:[#allocation62_spill] sm:$0xff]  ;;  %v3404_v45 = vld [vmem:[#allocation84_spill] sm:$0xff] }
 0x2c6   :  { %755 = vmatpush1.bf16.msra.mxu1 %v514_v52  ;;  %1424 = vmatpush1.bf16.msra.mxu0 %v3379_v0  ;;  %v1205_v50 = vpack.c.bf16 %v1201_v3, %v1199_v42  ;;  %v535_v18 = vpop.permute.xlu1 %534  ;;  %v1206_v4 = vpack.c.bf16 %v1202_v23, %v1200_v40  ;;  %v1251_v38 = vmul.f32 %v3394_v24, %v1229_v1  ;;  %v3400_v42 = vld [vmem:[#allocation64_spill] sm:$0xff]  ;;  %v3406_v0 = vld [vmem:[#allocation54_spill] sm:$0xff] }
 0x2c7   :  { %756 = vmatprep.subr.bf16.mxu1 %v3382_v10  ;;  %v540_v49 = vsel %vm536_vm7, %v3383_v34, %v535_v18  ;;  %v544_v58 = vsel %vm536_vm7, %v535_v18, %v3383_v34  ;;  %v1252_v30 = vmul.f32 %v3395_v63, %v1233_v19  ;;  %v3402_v40 = vpack.c.bf16 %v3400_v42, %v3401_v62  ;;  %v3403_v23 = vld [vmem:[#allocation16_spill] sm:$0xff]  ;;  %v3408_v34 = vld [vmem:[#allocation61_spill] sm:$0xff] }
 0x2c8   :  { %v564_v44 = vmul.f32 %v3384_v35, %v540_v49  ;;  %v565_v5 = vmul.f32 %v3385_v46, %v544_v58  ;;  %v587_v14 = vpop.permute.xlu0 %586  ;;  %1425 = vmatprep.subr.bf16.mxu0 %v1206_v4  ;;  %v1336_v8 = vsel %vm644_vm9, %v2866_v28, %v3403_v23  ;;  %v3009_v10 = vrot.slane %v1533_v20, %v2018_v11  ;;  %v3407_v4 = vld [vmem:[#allocation63_spill] sm:$0xff]  ;;  %v3426_v42 = vld [vmem:[#allocation72_spill] sm:$0xff] }
 0x2c9   :  { %v593_v9 = vsel %vm590_vm8, %v3386_v26, %v587_v14  ;;  %v597_v31 = vsel %vm590_vm8, %v587_v14, %v3386_v26  ;;  %v3409_v49 = vpack.c.bf16 %v3407_v4, %v3408_v34  ;;  %v3410_v58 = vld [vmem:[#allocation15_spill] sm:$0xff]  ;;  %v3414_v26 = vld [vmem:[#allocation68_spill] sm:$0xff] }
 0x2ca   :  { %757 = vmatpush1.bf16.msra.mxu1 %v3389_v59  ;;  %1426 = vmatpush1.bf16.msra.mxu0 %v1205_v50  ;;  %v568_v16 = vpack.c.bf16 %v564_v44, %v562_v47  ;;  %v1226_v29 = vpop.permute.xlu1 %1225  ;;  %v569_v53 = vpack.c.bf16 %v565_v5, %v563_v6  ;;  %v616_v33 = vmul.f32 %v3405_v21, %v593_v9  ;;  %v3411_v46 = vld [vmem:[#allocation71_spill] sm:$0xff]  ;;  %v3412_v6 = vld [vmem:[#allocation69_spill] sm:$0xff] }
 0x2cb   :  { %1427 = vmatprep.subr.bf16.mxu0 %v3392_v27  ;;  %v1230_v12 = vsel %vm536_vm7, %v3393_v48, %v1226_v29  ;;  %v1234_v56 = vsel %vm536_vm7, %v1226_v29, %v3393_v48  ;;  %v617_v50 = vmul.f32 %v3406_v0, %v597_v31  ;;  %v1335_v35 = vsel %vm644_vm9, %v2861_v32, %v3410_v58 }
 0x2cc   :  { %v1253_v22 = vmul.f32 %v3394_v24, %v1230_v12  ;;  %v1254_v25 = vmul.f32 %v3395_v63, %v1234_v56  ;;  %v1276_v52 = vpop.permute.xlu0 %1275  ;;  %758 = vmatprep.subr.bf16.mxu1 %v569_v53  ;;  %v3413_v44 = vpack.c.bf16 %v3411_v46, %v3412_v6  ;;  %v1518_v11 = vcombine.low %v3414_v26, %v3414_v26  ;;  %v3419_v56 = vld [vmem:[#allocation70_spill] sm:$0xff] }
 0x2cd   :  { %v1281_v39 = vsel %vm590_vm8, %v3396_v54, %v1276_v52  ;;  %v1285_v13 = vsel %vm590_vm8, %v1276_v52, %v3396_v54  ;;  %v1332_v9 = vsel %vm644_vm9, %v3403_v23, %v2866_v28  ;;  %v1354_v31 = vmul.f32 %v3009_v10, %v1336_v8  ;;  %v3418_v28 = vld [vmem:[#allocation3_spill] sm:$0xff]  ;;  %v3420_v24 = vld [vmem:[#allocation66_spill] sm:$0xff]  ;;  %v3423_v54 = vld [vmem:[#allocation73_spill] sm:$0xff] }
 0x2ce   :  { %759 = vmatpush1.bf16.msra.mxu1 %v568_v16  ;;  %1428 = vmatpush1.bf16.msra.mxu0 %v3399_v55  ;;  %v1257_v36 = vpack.c.bf16 %v1253_v22, %v1251_v38  ;;  %v589_v43 = vpop.permute.xlu1 %588  ;;  %v1258_v3 = vpack.c.bf16 %v1254_v25, %v1252_v30  ;;  %v3416_v16 = vld [vmem:[#allocation59_spill] sm:$0xff]  ;;  %v1304_v27 = vmul.f32 %v3417_v57, %v1285_v13 }
 0x2cf   :  { %760 = vmatprep.subr.bf16.mxu1 %v3402_v40  ;;  %v594_v1 = vsel %vm590_vm8, %v3404_v45, %v589_v43  ;;  %v598_v19 = vsel %vm590_vm8, %v589_v43, %v3404_v45  ;;  %v1303_v60 = vmul.f32 %v3416_v16, %v1281_v39  ;;  %v1344_v12 = vrot.slane %v1533_v20, %v3418_v28  ;;  %v3422_v52 = vld [vmem:[#allocation75_spill] sm:$0xff]  ;;  %v3425_v43 = vld [vmem:[#allocation74_spill] sm:$0xff] }
 0x2d0   :  { %v618_v18 = vmul.f32 %v3405_v21, %v594_v1  ;;  %v619_v15 = vmul.f32 %v3406_v0, %v598_v19  ;;  %v633_v61 = vpop.permute.xlu0 %632  ;;  %1429 = vmatprep.subr.bf16.mxu0 %v1258_v3  ;;  %v3421_v38 = vpack.c.bf16 %v3419_v56, %v3420_v24  ;;  %v1331_v63 = vsel %vm644_vm9, %v3410_v58, %v2861_v32  ;;  %v3429_v1 = vld [vmem:[#allocation65_spill] sm:$0xff]  ;;  %v3430_v21 = vld [vmem:[#allocation67_spill] sm:$0xff] }
 0x2d1   :  { %v1352_v30 = vmul.f32 %v3009_v10, %v1335_v35  ;;  %v3424_v39 = vpack.c.bf16 %v3422_v52, %v3423_v54  ;;  %v1353_v51 = vmul.f32 %v1344_v12, %v1332_v9  ;;  %v1351_v20 = vmul.f32 %v1344_v12, %v1331_v63  ;;  %v1565_v35 = vld [vmem:[%s3123_s6 + $0x8] ss:$0 sps:$4 sm:$0xff]  }
 0x2d2   :  { %761 = vmatpush1.bf16.msra.mxu1 %v3409_v49  ;;  %1430 = vmatpush1.bf16.msra.mxu0 %v1257_v36  ;;  %v622_v47 = vpack.c.bf16 %v618_v18, %v616_v33  ;;  %v1278_v5 = vpop.permute.xlu1 %1277  ;;  %v623_v14 = vpack.c.bf16 %v619_v15, %v617_v50  ;;  %v3427_v62 = vpack.c.bf16 %v3425_v43, %v3426_v42  ;;  %v3428_v3 = vmov 0  }
 0x2d3   :  { %1431 = vmatprep.subr.bf16.mxu0 %v3413_v44  ;;  %v1282_v7 = vsel %vm590_vm8, %v3415_v2, %v1278_v5  ;;  %v1286_v59 = vsel %vm590_vm8, %v1278_v5, %v3415_v2  ;;  %v1360_v55 = vpack.c.bf16 %v1354_v31, %v1352_v30  ;;  %v1359_v23 = vpack.c.bf16 %v1353_v51, %v1351_v20 }
 0x2d4   :  { %v1305_v29 = vmul.f32 %v3416_v16, %v1282_v7  ;;  %v1306_v53 = vmul.f32 %v3417_v57, %v1286_v59  ;;  %v641_v48 = vpop.permute.xlu0 %640  ;;  %762 = vmatprep.subr.bf16.mxu1 %v623_v14  ;;  %v815_v26 = vcombine.high %v1568_v41, %v1568_v41  ;;  %v1569_v16 = vld [vmem:[%s3121_s0 + $0x8] sm:$0xff] }
 0x2d5   :  { %v647_v36 = vsel %vm644_vm9, %v633_v61, %v641_v48  ;;  %v651_v32 = vsel %vm644_vm9, %v641_v48, %v633_v61 }
 0x2d6   :  { %763 = vmatpush1.bf16.msra.mxu1 %v622_v47  ;;  %1432 = vmatpush1.bf16.msra.mxu0 %v3421_v38  ;;  %v1309_v22 = vpack.c.bf16 %v1305_v29, %v1303_v60  ;;  %v1322_v25 = vpop.permute.xlu1 %1321  ;;  %v1310_v13 = vpack.c.bf16 %v1306_v53, %v1304_v27  ;;  %v670_v19 = vmul.f32 %v3429_v1, %v647_v36 }
 0x2d7   :  { %773 = vmatprep.subr.bf16.mxu1 %v3424_v39  ;;  %v671_v33 = vmul.f32 %v3430_v21, %v651_v32  ;;  %v1486_v60 = vcombine.high %v1569_v16, %v1569_v16 }
 0x2d8   :  { %v1320_v37 = vpop.permute.xlu0 %1319  ;;  %1433 = vmatprep.subr.bf16.mxu0 %v1310_v13 }
 0x2d9   :  { %765 = vmatmul.mubr.bf16.vlgmr.msra.gmra.mrb[8].mxu1 %v1518_v11 }
 0x2da   :  { %774 = vmatpush1.bf16.msra.mxu1 %v3427_v62  ;;  %1434 = vmatpush1.bf16.msra.mxu0 %v1309_v22  ;;  %v643_v40 = vpop.permute.xlu1 %642 }
 0x2db   :  { %1444 = vmatprep.subr.bf16.mxu0 %v1360_v55  ;;  %805 = vmatprep.mubr.bf16.mxu1 %v3428_v3  ;;  %v648_v8 = vsel %vm644_vm9, %v2884_v17, %v643_v40  ;;  %v652_v45 = vsel %vm644_vm9, %v643_v40, %v2884_v17 }
 0x2dc   :  { %v672_v0 = vmul.f32 %v3429_v1, %v648_v8  ;;  %v673_v50 = vmul.f32 %v3430_v21, %v652_v45  ;;  %v1328_v18 = vpop.permute.xlu0 %1327 }
 0x2dd   :  { %1436 = vmatmul.mubr.bf16.vlgmr.msra.gmra.mrb[8].mxu0 %v1518_v11  ;;  %v1333_v15 = vsel %vm644_vm9, %v1320_v37, %v1328_v18  ;;  %v1337_v61 = vsel %vm644_vm9, %v1328_v18, %v1320_v37 }
 0x2de   :  { %1445 = vmatpush1.bf16.msra.mxu0 %v1359_v23  ;;  %1476 = vmatprep.mubr.bf16.mxu0 %v3428_v3  ;;  %v676_v17 = vpack.c.bf16 %v672_v0, %v670_v19  ;;  %v1330_v4 = vpop.permute.xlu1 %1329  ;;  %v677_v34 = vpack.c.bf16 %v673_v50, %v671_v33  ;;  %v1355_v47 = vmul.f32 %v1344_v12, %v1333_v15 }
 0x2df   :  { %v1334_v49 = vsel %vm644_vm9, %v1322_v25, %v1330_v4  ;;  %v1338_v58 = vsel %vm644_vm9, %v1330_v4, %v1322_v25  ;;  %v1356_v46 = vmul.f32 %v3009_v10, %v1337_v61 }
 0x2e0   :  { %v1357_v6 = vmul.f32 %v1344_v12, %v1334_v49  ;;  %v1358_v44 = vmul.f32 %v3009_v10, %v1338_v58  ;;  %775 = vmatprep.subr.bf16.mxu1 %v677_v34 }
 0x2e1   :  { %776 = vmatpush1.bf16.msra.mxu1 %v676_v17 }
 0x2e2   :  { %v1361_v5 = vpack.c.bf16 %v1357_v6, %v1355_v47  ;;  %v1362_v14 = vpack.c.bf16 %v1358_v44, %v1356_v46 }
 0x2e4   :  { %1446 = vmatprep.subr.bf16.mxu0 %v1362_v14 }
 0x2e5   :  { %1521 = vmatmul.mubr.msk.bf16.vlgmr.msra.gmra.mrb[8].mxu1 %vm728_vm10, %v1565_v35  ;;  %1447 = vmatpush1.bf16.msra.mxu0 %v1361_v5 }
 0x2e9   :  { %1534 = vmatmul.mubr.msk.bf16.vlgmr.msra.gmra.mrb[8].mxu0 %vm728_vm10, %v1565_v35 }
 0x3b8   :  { %v807_v11 = vpop.f32.mrb[8].mxu1 }
 0x3b9   :  { %v819_v9 = vrot.slane %v807_v11, 4  ;;  %v809_v31 = vpop.f32.mrb[9].mxu1 }
 0x3ba   :  { %v820_v2 = vrot.slane %v809_v31, 4  ;;  %v811_v10 = vpop.f32.mrb[10].mxu1 }
 0x3bb   :  { %v824_v7 = vsel %vm823_vm11, %v1568_v41, %v819_v9  ;;  %828 = vst [vmem:[%s3124_s8 + $0x10] sm:$0xf] %v819_v9  ;;  %v812_v59 = vpop.f32.mrb[11].mxu1 }
 0x3bc   :  { %826 = vst [vmem:[%s3124_s8] sm:$0xff] %v824_v7  ;;  %v825_v57 = vsel %vm823_vm11, %v815_v26, %v820_v2  ;;  %829 = vst [vmem:[%s3124_s8 + $0x18] sm:$0xf] %v820_v2  ;;  %v1478_v27 = vpop.f32.mrb[8].mxu0 }
 0x3bd   :  { %827 = vst [vmem:[%s3124_s8 + $0x8] sm:$0xff] %v825_v57  ;;  %v1490_v29 = vrot.slane %v1478_v27, 4  ;;  %v1480_v53 = vpop.f32.mrb[9].mxu0 }
 0x3be   :  { %v1491_v48 = vrot.slane %v1480_v53, 4  ;;  %v1482_v28 = vpop.f32.mrb[10].mxu0 }
 0x3bf   :  { %v1494_v12 = vsel %vm823_vm11, %v1569_v16, %v1490_v29  ;;  %1537 = vst [vmem:[%s3124_s8 + $0x30] sm:$0xf] %v1490_v29  ;;  %v1483_v56 = vpop.f32.mrb[11].mxu0 }
 0x3c0   :  { %1535 = vst [vmem:[%s3124_s8 + $0x20] sm:$0xff] %v1494_v12  ;;  %v1495_v24 = vsel %vm823_vm11, %v1486_v60, %v1491_v48  ;;  %1538 = vst [vmem:[%s3124_s8 + $0x38] sm:$0xf] %v1491_v48 }
 0x3c1   :  { %1536 = vst [vmem:[%s3124_s8 + $0x28] sm:$0xff] %v1495_v24 }

</bundles_post_ra>
